<compile_context>
chip_gen: v5e
topology: v5e:2x2
jax: 0.10.0
libtpu: 0.0.40
codegen_flags: <defaults>
</compile_context>

<pallas_src>
import functools
import math

import jax
import jax.numpy as jnp
from jax.experimental import pallas as pl
from jax.experimental.pallas import tpu as pltpu


def _round_up(v, m):
    return ((v + m - 1) // m) * m


def _vmem_capacity_bytes():
    try:
        return int(pltpu.get_tpu_info().vmem_capacity_bytes)
    except Exception:
        return 128 * 1024 * 1024


def inception_kernel(x_ref,
                     wA_ref, bA_ref,
                     w2b_ref, b2b_ref,
                     w3b_ref, b3b_ref,
                     w3c_ref, b3c_ref,
                     w4_ref, b4_ref,
                     o_ref, *, H):
    R = x_ref.shape[0]                      # R = B*H rows; whole columns per block
    x = x_ref[...]                          # (R, Cin) bf16

    # Row index within each H-column; shifts never leak across (n, w) columns
    # because the wrapped boundary rows are always masked.
    h_col = jax.lax.broadcasted_iota(jnp.int32, (R, 1), 0) % H
    top_row = h_col == 0
    bot_row = h_col == H - 1

    def shift_up(t):        # row r <- t[r-1] within its column; h==0 -> 0 (zero pad)
        return jnp.where(top_row, 0.0, pltpu.roll(t, 1, axis=0))

    def shift_down(t):      # row r <- t[r+1] within its column; h==H-1 -> 0
        return jnp.where(bot_row, 0.0, pltpu.roll(t, R - 1, axis=0))

    # ---- fused stage-1 1x1 convs: branch1(64) | branch2a(48->64 pad) | branch3a(64)
    yA = jnp.dot(x, wA_ref[...], preferred_element_type=jnp.float32)
    yA = jnp.maximum(yA + bA_ref[...], 0.0)             # (R, 192) f32
    br1 = yA[:, 0:64].astype(jnp.bfloat16)

    def conv3x1(t, w_ref, b_ref):
        # Fused 3-tap (3,1) conv along H: one dot with K = 3*Cmid.
        cat = jnp.concatenate([shift_up(t), t, shift_down(t)], axis=-1)
        y = jnp.dot(cat.astype(jnp.bfloat16), w_ref[...],
                    preferred_element_type=jnp.float32)
        return jnp.maximum(y + b_ref[...], 0.0)          # (R, Cout) f32

    # branch2: 1x1 (48, padded to 64) -> (3,1) (64)
    br2 = conv3x1(yA[:, 64:128], w2b_ref, b2b_ref).astype(jnp.bfloat16)
    # branch3: 1x1 (64) -> (3,1) (96) -> (3,1) (96)
    m3 = conv3x1(yA[:, 128:192], w3b_ref, b3b_ref)
    br3 = conv3x1(m3, w3c_ref, b3c_ref).astype(jnp.bfloat16)

    # ---- branch4: MaxPool (3,1) stride 1 pad (1,0) -> 1x1 conv (32)
    # Edge-replicate is mathematically identical to -inf padding for a 3-tap max.
    xf = x.astype(jnp.float32)
    x_up = jnp.where(top_row, xf, pltpu.roll(xf, 1, axis=0))
    x_dn = jnp.where(bot_row, xf, pltpu.roll(xf, R - 1, axis=0))
    pooled = jnp.maximum(jnp.maximum(x_up, xf), x_dn).astype(jnp.bfloat16)
    y4 = jnp.dot(pooled, w4_ref[...], preferred_element_type=jnp.float32)
    br4 = jnp.maximum(y4 + b4_ref[...], 0.0).astype(jnp.bfloat16)

    # channel concat [64, 64, 96, 32] -> 256; single lane-dense bf16 store
    o_ref[...] = jnp.concatenate([br1, br2, br3, br4], axis=-1)


def make_convblock_params(key, cin, cout, kh):
    """Conv2d(cin, cout, (kh,1), bias=False) + BatchNorm2d(cout), BN folded."""
    k1, k2, k3, k4, k5 = jax.random.split(key, 5)
    w = jax.random.normal(k1, (cout, cin, kh, 1), jnp.float32) / math.sqrt(cin * kh)
    gamma = 1.0 + 0.1 * jax.random.normal(k2, (cout,), jnp.float32)
    beta = 0.05 * jax.random.normal(k3, (cout,), jnp.float32)
    mean = 0.1 * jax.random.normal(k4, (cout,), jnp.float32)
    var = 0.5 + 0.5 * jnp.abs(jax.random.normal(k5, (cout,), jnp.float32))
    eps = 1e-5
    scale = gamma / jnp.sqrt(var + eps)
    w_folded = w * scale[:, None, None, None]        # (O, I, kh, 1)
    b_folded = beta - mean * scale                   # (O,)
    return w_folded, b_folded


def make_inception_params(key, in_channel):
    keys = jax.random.split(key, 7)
    return {
        "b1":  make_convblock_params(keys[0], in_channel, 64, 1),
        "b2a": make_convblock_params(keys[1], in_channel, 48, 1),
        "b2b": make_convblock_params(keys[2], 48, 64, 3),
        "b3a": make_convblock_params(keys[3], in_channel, 64, 1),
        "b3b": make_convblock_params(keys[4], 64, 96, 3),
        "b3c": make_convblock_params(keys[5], 96, 96, 3),
        "b4":  make_convblock_params(keys[6], in_channel, 32, 1),
    }


def _kernel_weights(params, wdtype=jnp.bfloat16):
    """Reshape folded conv weights to kernel layout and fuse.

    1x1 -> (Cin, Cout);  (3,1) -> (3*Cin, Cout) with taps stacked along K.
    The three stage-1 1x1 convs (b1, b2a, b3a) fuse into one (Cin, 192)
    weight; b2a is zero-padded 48 -> 64 output channels (and the matching
    K-rows of b2b are zero) so stage-1 branch slices are 64-lane aligned.
    Weights in bf16 (MXU operands), biases in f32 (added post-accumulate).
    """
    def w1x1(wb, pad_to=None):
        w, b = wb
        wt = w[:, :, 0, 0].T                  # (Cin, Cout)
        bt = b.reshape(1, -1)
        if pad_to is not None and pad_to > wt.shape[1]:
            extra = pad_to - wt.shape[1]
            wt = jnp.pad(wt, ((0, 0), (0, extra)))
            bt = jnp.pad(bt, ((0, 0), (0, extra)))
        return wt, bt

    def w3x1(wb, pad_cin_to=None):
        w, b = wb
        wt = jnp.transpose(w[:, :, :, 0], (2, 1, 0))          # (3, Cin, Cout)
        if pad_cin_to is not None and pad_cin_to > wt.shape[1]:
            wt = jnp.pad(wt, ((0, 0), (0, pad_cin_to - wt.shape[1]), (0, 0)))
        return wt.reshape(-1, wt.shape[-1]), b.reshape(1, -1)  # (3*Cin', Cout)

    w1, b1 = w1x1(params["b1"])
    w2a, b2a = w1x1(params["b2a"], pad_to=64)     # 48 -> 64 (lane-aligned slices)
    w3a, b3a = w1x1(params["b3a"])
    wA = jnp.concatenate([w1, w2a, w3a], axis=1)  # (Cin, 192)
    bA = jnp.concatenate([b1, b2a, b3a], axis=1)  # (1, 192)
    w2b, b2b = w3x1(params["b2b"], pad_cin_to=64)  # (192, 64), padded rows zero
    w3b, b3b = w3x1(params["b3b"])                 # (192, 96)
    w3c, b3c = w3x1(params["b3c"])                 # (288, 96)
    w4, b4 = w1x1(params["b4"])                    # (Cin, 32)

    arrs = [wA, bA, w2b, b2b, w3b, b3b, w3c, b3c, w4, b4]
    return [a.astype(wdtype) if i % 2 == 0 else a.astype(jnp.float32)
            for i, a in enumerate(arrs)]


def inception_pallas(x_nchw, params, block_b=None):
    N, Cin, H, W = x_nchw.shape
    Cout = 64 + 64 + 96 + 32
    NW = N * W

    # NCHW -> rows (n, w, h) x channels.  Transpose + bf16 cast fuse into one
    # XLA pass; the trailing reshape is free (contiguous merge).
    xt = jnp.transpose(x_nchw, (0, 3, 2, 1)).astype(jnp.bfloat16)
    xt = xt.reshape(NW * H, Cin)

    weights = _kernel_weights(params)

    # --- generation-aware block sizing -------------------------------------
    vmem_cap = _vmem_capacity_bytes()
    b_cap = 512 if vmem_cap >= 96 * (1 << 20) else 256   # smaller tiles on v7x (64 MiB VMEM)
    if block_b is not None:
        b_cap = min(b_cap, int(block_b))

    # Keep B*H a multiple of 16 (bf16 sublane packing) and aim for ~8 grid
    # steps so both v7x TensorCores get work and the DMA pipeline overlaps.
    align = 16 // math.gcd(H, 16)
    target_steps = 8
    B = _round_up(max(1, pl.cdiv(NW, target_steps)), align)
    B = min(B, _round_up(NW, align), max(align, b_cap))
    B = max(B, align)

    NW_pad = _round_up(NW, B)
    if NW_pad != NW:
        xt = jnp.pad(xt, ((0, (NW_pad - NW) * H), (0, 0)))
    grid = (NW_pad // B,)
    rows_blk = B * H

    kernel = functools.partial(inception_kernel, H=H)

    # Weights/biases are grid-invariant and tiny; default double-buffering is
    # a negligible VMEM cost.
    def wspec(w):
        return pl.BlockSpec(w.shape, lambda i: (0, 0))

    in_specs = [pl.BlockSpec((rows_blk, Cin), lambda i: (i, 0))]
    in_specs += [wspec(w) for w in weights]

    out = pl.pallas_call(
        kernel,
        out_shape=jax.ShapeDtypeStruct((NW_pad * H, Cout), jnp.bfloat16),
        grid=grid,
        in_specs=in_specs,
        out_specs=pl.BlockSpec((rows_blk, Cout), lambda i: (i, 0)),
        compiler_params=pltpu.CompilerParams(
            dimension_semantics=("parallel",),
            vmem_limit_bytes=int(min(64 * (1 << 20), vmem_cap // 2)),
        ),
    )(xt, *weights)

    out = out[:NW * H].reshape(N, W, H, Cout)
    return jnp.transpose(out, (0, 3, 2, 1))      # (N, 256, H, W), bf16


def inception_reference(x_nchw, params):
    """Pure-JAX f32 reference (lax.conv / reduce_window) with the same folded params."""
    def cb(t, wb, pad_h):
        w, b = wb
        y = jax.lax.conv_general_dilated(
            t, w, window_strides=(1, 1),
            padding=((pad_h, pad_h), (0, 0)),
            dimension_numbers=("NCHW", "OIHW", "NCHW"))
        return jnp.maximum(y + b[None, :, None, None], 0.0)

    br1 = cb(x_nchw, params["b1"], 0)
    br2 = cb(cb(x_nchw, params["b2a"], 0), params["b2b"], 1)
    br3 = cb(cb(cb(x_nchw, params["b3a"], 0), params["b3b"], 1), params["b3c"], 1)
    pooled = jax.lax.reduce_window(
        x_nchw, -jnp.inf, jax.lax.max,
        (1, 1, 3, 1), (1, 1, 1, 1), ((0, 0), (0, 0), (1, 1), (0, 0)))
    br4 = cb(pooled, params["b4"], 0)
    return jnp.concatenate([br1, br2, br3, br4], axis=1)


if __name__ == "__main__":
    key = jax.random.PRNGKey(0)
    kx, kp = jax.random.split(key)

    N, Cin, H, W = 2, 4, 16, 16
    x = jax.random.normal(kx, (N, Cin, H, W), jnp.float32)
    params = make_inception_params(kp, Cin)

    out = jax.block_until_ready(inception_pallas(x, params))
    ref = inception_reference(x, params)

    assert out.shape == (N, 256, H, W), out.shape
    out_f32 = out.astype(jnp.float32)
    max_err = float(jnp.max(jnp.abs(out_f32 - ref)))
    # bf16 operands / bf16 output (f32 accumulate) -> relaxed tolerance vs f32 ref
    assert jnp.allclose(out_f32, ref, rtol=5e-2, atol=5e-2), max_err

    print("KERNEL_OK")
</pallas_src>

<mosaic_0001>
module attributes {stable_mosaic.version = 11 : i64} {
  func.func @inception_kernel(%arg0: i32, %arg1: memref<64x4xbf16, #tpu.memory_space<vmem>>, %arg2: memref<4x192xbf16, #tpu.memory_space<vmem>>, %arg3: memref<1x192xf32, #tpu.memory_space<vmem>>, %arg4: memref<192x64xbf16, #tpu.memory_space<vmem>>, %arg5: memref<1x64xf32, #tpu.memory_space<vmem>>, %arg6: memref<192x96xbf16, #tpu.memory_space<vmem>>, %arg7: memref<1x96xf32, #tpu.memory_space<vmem>>, %arg8: memref<288x96xbf16, #tpu.memory_space<vmem>>, %arg9: memref<1x96xf32, #tpu.memory_space<vmem>>, %arg10: memref<4x32xbf16, #tpu.memory_space<vmem>>, %arg11: memref<1x32xf32, #tpu.memory_space<vmem>>, %arg12: memref<64x256xbf16, #tpu.memory_space<vmem>>) attributes {dimension_semantics = [#tpu.dimension_semantics<parallel>], iteration_bounds = array<i64: 8>, scalar_prefetch = 0 : i64, scratch_operands = 0 : i64, tpu.core_type = #tpu.core_type<tc>, window_params = [{transform_indices = @transform_0, window_bounds = array<i64: 64, 4>}, {pipeline_mode = #tpu.pipeline_mode<synchronous>, transform_indices = @transform_1, window_bounds = array<i64: 4, 192>}, {pipeline_mode = #tpu.pipeline_mode<synchronous>, transform_indices = @transform_2, window_bounds = array<i64: 1, 192>}, {pipeline_mode = #tpu.pipeline_mode<synchronous>, transform_indices = @transform_3, window_bounds = array<i64: 192, 64>}, {pipeline_mode = #tpu.pipeline_mode<synchronous>, transform_indices = @transform_4, window_bounds = array<i64: 1, 64>}, {pipeline_mode = #tpu.pipeline_mode<synchronous>, transform_indices = @transform_5, window_bounds = array<i64: 192, 96>}, {pipeline_mode = #tpu.pipeline_mode<synchronous>, transform_indices = @transform_6, window_bounds = array<i64: 1, 96>}, {pipeline_mode = #tpu.pipeline_mode<synchronous>, transform_indices = @transform_7, window_bounds = array<i64: 288, 96>}, {pipeline_mode = #tpu.pipeline_mode<synchronous>, transform_indices = @transform_8, window_bounds = array<i64: 1, 96>}, {pipeline_mode = #tpu.pipeline_mode<synchronous>, transform_indices = @transform_9, window_bounds = array<i64: 4, 32>}, {pipeline_mode = #tpu.pipeline_mode<synchronous>, transform_indices = @transform_10, window_bounds = array<i64: 1, 32>}, {transform_indices = @transform_11, window_bounds = array<i64: 64, 256>}]} {
    %c0 = arith.constant 0 : index
    %c0_0 = arith.constant 0 : index
    %0 = vector.load %arg1[%c0, %c0_0] : memref<64x4xbf16, #tpu.memory_space<vmem>>, vector<64x4xbf16>
    %1 = tpu.iota {dimensions = array<i32: 0>} : vector<64x1xi32>
    %c16_i32 = arith.constant 16 : i32
    %c0_i32 = arith.constant 0 : i32
    %2 = arith.cmpi eq, %c16_i32, %c0_i32 : i32
    %c1_i32 = arith.constant 1 : i32
    %3 = arith.select %2, %c1_i32, %c16_i32 : i32
    %4 = vector.broadcast %3 : i32 to vector<64x1xi32>
    %5 = arith.remsi %1, %4 : vector<64x1xi32>
    %c0_i32_1 = arith.constant 0 : i32
    %6 = vector.broadcast %c0_i32_1 : i32 to vector<64x1xi32>
    %7 = arith.cmpi ne, %5, %6 : vector<64x1xi32>
    %c0_i32_2 = arith.constant 0 : i32
    %8 = vector.broadcast %c0_i32_2 : i32 to vector<64x1xi32>
    %9 = arith.cmpi slt, %5, %8 : vector<64x1xi32>
    %c0_i32_3 = arith.constant 0 : i32
    %10 = arith.cmpi slt, %3, %c0_i32_3 : i32
    %11 = vector.broadcast %10 : i1 to vector<64x1xi1>
    %12 = vector.broadcast %11 : vector<64x1xi1> to vector<64x1xi1>
    %13 = arith.xori %9, %12 : vector<64x1xi1>
    %14 = arith.andi %13, %7 : vector<64x1xi1>
    %15 = vector.broadcast %3 : i32 to vector<64x1xi32>
    %16 = arith.addi %5, %15 : vector<64x1xi32>
    %17 = arith.select %14, %16, %5 : vector<64x1xi1>, vector<64x1xi32>
    %c0_i32_4 = arith.constant 0 : i32
    %18 = vector.broadcast %c0_i32_4 : i32 to vector<64x1xi32>
    %19 = arith.cmpi eq, %17, %18 : vector<64x1xi32>
    %c15_i32 = arith.constant 15 : i32
    %20 = vector.broadcast %c15_i32 : i32 to vector<64x1xi32>
    %21 = arith.cmpi eq, %17, %20 : vector<64x1xi32>
    %c0_5 = arith.constant 0 : index
    %c0_6 = arith.constant 0 : index
    %22 = vector.load %arg2[%c0_5, %c0_6] : memref<4x192xbf16, #tpu.memory_space<vmem>>, vector<4x192xbf16>
    %cst = arith.constant dense<0.000000e+00> : vector<64x192xf32>
    %23 = tpu.matmul %0, %22, %cst {dimension_numbers = #tpu.dot_dimension_numbers<[1], [0], [0], [1], [0, 0, 1, 1], [], []>} : vector<64x4xbf16>, vector<4x192xbf16>, vector<64x192xf32> -> vector<64x192xf32>
    %c0_7 = arith.constant 0 : index
    %c0_8 = arith.constant 0 : index
    %24 = vector.load %arg3[%c0_7, %c0_8] : memref<1x192xf32, #tpu.memory_space<vmem>>, vector<1x192xf32>
    %25 = vector.broadcast %24 : vector<1x192xf32> to vector<64x192xf32>
    %26 = arith.addf %23, %25 : vector<64x192xf32>
    %cst_9 = arith.constant 0.000000e+00 : f32
    %27 = vector.broadcast %cst_9 : f32 to vector<64x192xf32>
    %28 = arith.maximumf %26, %27 : vector<64x192xf32>
    %29 = vector.extract_strided_slice %28 {offsets = [0, 0], sizes = [64, 64], strides = [1, 1]} : vector<64x192xf32> to vector<64x64xf32>
    %30 = arith.truncf %29 : vector<64x64xf32> to vector<64x64xbf16>
    %31 = vector.extract_strided_slice %28 {offsets = [0, 64], sizes = [64, 64], strides = [1, 1]} : vector<64x192xf32> to vector<64x64xf32>
    %c1_i32_10 = arith.constant 1 : i32
    %32 = tpu.dynamic_rotate %31 by %c1_i32_10 dim 0 : vector<64x64xf32>, i32 -> vector<64x64xf32>
    %cst_11 = arith.constant 0.000000e+00 : f32
    %33 = vector.shape_cast %19 : vector<64x1xi1> to vector<64x1xi1>
    %34 = vector.broadcast %33 : vector<64x1xi1> to vector<64x64xi1>
    %35 = vector.broadcast %cst_11 : f32 to vector<64x64xf32>
    %36 = arith.select %34, %35, %32 : vector<64x64xi1>, vector<64x64xf32>
    %c63_i32 = arith.constant 63 : i32
    %37 = tpu.dynamic_rotate %31 by %c63_i32 dim 0 : vector<64x64xf32>, i32 -> vector<64x64xf32>
    %cst_12 = arith.constant 0.000000e+00 : f32
    %38 = vector.shape_cast %21 : vector<64x1xi1> to vector<64x1xi1>
    %39 = vector.broadcast %38 : vector<64x1xi1> to vector<64x64xi1>
    %40 = vector.broadcast %cst_12 : f32 to vector<64x64xf32>
    %41 = arith.select %39, %40, %37 : vector<64x64xi1>, vector<64x64xf32>
    %42 = tpu.concatenate %36, %31, %41 in 1 : vector<64x64xf32>, vector<64x64xf32>, vector<64x64xf32> -> vector<64x192xf32>
    %43 = arith.truncf %42 : vector<64x192xf32> to vector<64x192xbf16>
    %c0_13 = arith.constant 0 : index
    %c0_14 = arith.constant 0 : index
    %44 = vector.load %arg4[%c0_13, %c0_14] : memref<192x64xbf16, #tpu.memory_space<vmem>>, vector<192x64xbf16>
    %cst_15 = arith.constant dense<0.000000e+00> : vector<64x64xf32>
    %45 = tpu.matmul %43, %44, %cst_15 {dimension_numbers = #tpu.dot_dimension_numbers<[1], [0], [0], [1], [0, 0, 1, 1], [], []>} : vector<64x192xbf16>, vector<192x64xbf16>, vector<64x64xf32> -> vector<64x64xf32>
    %c0_16 = arith.constant 0 : index
    %c0_17 = arith.constant 0 : index
    %46 = vector.load %arg5[%c0_16, %c0_17] : memref<1x64xf32, #tpu.memory_space<vmem>>, vector<1x64xf32>
    %47 = vector.broadcast %46 : vector<1x64xf32> to vector<64x64xf32>
    %48 = arith.addf %45, %47 : vector<64x64xf32>
    %cst_18 = arith.constant 0.000000e+00 : f32
    %49 = vector.broadcast %cst_18 : f32 to vector<64x64xf32>
    %50 = arith.maximumf %48, %49 : vector<64x64xf32>
    %51 = arith.truncf %50 : vector<64x64xf32> to vector<64x64xbf16>
    %52 = vector.extract_strided_slice %28 {offsets = [0, 128], sizes = [64, 64], strides = [1, 1]} : vector<64x192xf32> to vector<64x64xf32>
    %c1_i32_19 = arith.constant 1 : i32
    %53 = tpu.dynamic_rotate %52 by %c1_i32_19 dim 0 : vector<64x64xf32>, i32 -> vector<64x64xf32>
    %cst_20 = arith.constant 0.000000e+00 : f32
    %54 = vector.shape_cast %19 : vector<64x1xi1> to vector<64x1xi1>
    %55 = vector.broadcast %54 : vector<64x1xi1> to vector<64x64xi1>
    %56 = vector.broadcast %cst_20 : f32 to vector<64x64xf32>
    %57 = arith.select %55, %56, %53 : vector<64x64xi1>, vector<64x64xf32>
    %c63_i32_21 = arith.constant 63 : i32
    %58 = tpu.dynamic_rotate %52 by %c63_i32_21 dim 0 : vector<64x64xf32>, i32 -> vector<64x64xf32>
    %cst_22 = arith.constant 0.000000e+00 : f32
    %59 = vector.shape_cast %21 : vector<64x1xi1> to vector<64x1xi1>
    %60 = vector.broadcast %59 : vector<64x1xi1> to vector<64x64xi1>
    %61 = vector.broadcast %cst_22 : f32 to vector<64x64xf32>
    %62 = arith.select %60, %61, %58 : vector<64x64xi1>, vector<64x64xf32>
    %63 = tpu.concatenate %57, %52, %62 in 1 : vector<64x64xf32>, vector<64x64xf32>, vector<64x64xf32> -> vector<64x192xf32>
    %64 = arith.truncf %63 : vector<64x192xf32> to vector<64x192xbf16>
    %c0_23 = arith.constant 0 : index
    %c0_24 = arith.constant 0 : index
    %65 = vector.load %arg6[%c0_23, %c0_24] : memref<192x96xbf16, #tpu.memory_space<vmem>>, vector<192x96xbf16>
    %cst_25 = arith.constant dense<0.000000e+00> : vector<64x96xf32>
    %66 = tpu.matmul %64, %65, %cst_25 {dimension_numbers = #tpu.dot_dimension_numbers<[1], [0], [0], [1], [0, 0, 1, 1], [], []>} : vector<64x192xbf16>, vector<192x96xbf16>, vector<64x96xf32> -> vector<64x96xf32>
    %c0_26 = arith.constant 0 : index
    %c0_27 = arith.constant 0 : index
    %67 = vector.load %arg7[%c0_26, %c0_27] : memref<1x96xf32, #tpu.memory_space<vmem>>, vector<1x96xf32>
    %68 = vector.broadcast %67 : vector<1x96xf32> to vector<64x96xf32>
    %69 = arith.addf %66, %68 : vector<64x96xf32>
    %cst_28 = arith.constant 0.000000e+00 : f32
    %70 = vector.broadcast %cst_28 : f32 to vector<64x96xf32>
    %71 = arith.maximumf %69, %70 : vector<64x96xf32>
    %c1_i32_29 = arith.constant 1 : i32
    %72 = tpu.dynamic_rotate %71 by %c1_i32_29 dim 0 : vector<64x96xf32>, i32 -> vector<64x96xf32>
    %cst_30 = arith.constant 0.000000e+00 : f32
    %73 = vector.shape_cast %19 : vector<64x1xi1> to vector<64x1xi1>
    %74 = vector.broadcast %73 : vector<64x1xi1> to vector<64x96xi1>
    %75 = vector.broadcast %cst_30 : f32 to vector<64x96xf32>
    %76 = arith.select %74, %75, %72 : vector<64x96xi1>, vector<64x96xf32>
    %c63_i32_31 = arith.constant 63 : i32
    %77 = tpu.dynamic_rotate %71 by %c63_i32_31 dim 0 : vector<64x96xf32>, i32 -> vector<64x96xf32>
    %cst_32 = arith.constant 0.000000e+00 : f32
    %78 = vector.shape_cast %21 : vector<64x1xi1> to vector<64x1xi1>
    %79 = vector.broadcast %78 : vector<64x1xi1> to vector<64x96xi1>
    %80 = vector.broadcast %cst_32 : f32 to vector<64x96xf32>
    %81 = arith.select %79, %80, %77 : vector<64x96xi1>, vector<64x96xf32>
    %82 = tpu.concatenate %76, %71, %81 in 1 : vector<64x96xf32>, vector<64x96xf32>, vector<64x96xf32> -> vector<64x288xf32>
    %83 = arith.truncf %82 : vector<64x288xf32> to vector<64x288xbf16>
    %c0_33 = arith.constant 0 : index
    %c0_34 = arith.constant 0 : index
    %84 = vector.load %arg8[%c0_33, %c0_34] : memref<288x96xbf16, #tpu.memory_space<vmem>>, vector<288x96xbf16>
    %cst_35 = arith.constant dense<0.000000e+00> : vector<64x96xf32>
    %85 = tpu.matmul %83, %84, %cst_35 {dimension_numbers = #tpu.dot_dimension_numbers<[1], [0], [0], [1], [0, 0, 1, 1], [], []>} : vector<64x288xbf16>, vector<288x96xbf16>, vector<64x96xf32> -> vector<64x96xf32>
    %c0_36 = arith.constant 0 : index
    %c0_37 = arith.constant 0 : index
    %86 = vector.load %arg9[%c0_36, %c0_37] : memref<1x96xf32, #tpu.memory_space<vmem>>, vector<1x96xf32>
    %87 = vector.broadcast %86 : vector<1x96xf32> to vector<64x96xf32>
    %88 = arith.addf %85, %87 : vector<64x96xf32>
    %cst_38 = arith.constant 0.000000e+00 : f32
    %89 = vector.broadcast %cst_38 : f32 to vector<64x96xf32>
    %90 = arith.maximumf %88, %89 : vector<64x96xf32>
    %91 = arith.truncf %90 : vector<64x96xf32> to vector<64x96xbf16>
    %92 = arith.extf %0 : vector<64x4xbf16> to vector<64x4xf32>
    %c1_i32_39 = arith.constant 1 : i32
    %93 = tpu.dynamic_rotate %92 by %c1_i32_39 dim 0 : vector<64x4xf32>, i32 -> vector<64x4xf32>
    %94 = vector.shape_cast %19 : vector<64x1xi1> to vector<64x1xi1>
    %95 = vector.broadcast %94 : vector<64x1xi1> to vector<64x4xi1>
    %96 = arith.select %95, %92, %93 : vector<64x4xi1>, vector<64x4xf32>
    %c63_i32_40 = arith.constant 63 : i32
    %97 = tpu.dynamic_rotate %92 by %c63_i32_40 dim 0 : vector<64x4xf32>, i32 -> vector<64x4xf32>
    %98 = vector.shape_cast %21 : vector<64x1xi1> to vector<64x1xi1>
    %99 = vector.broadcast %98 : vector<64x1xi1> to vector<64x4xi1>
    %100 = arith.select %99, %92, %97 : vector<64x4xi1>, vector<64x4xf32>
    %101 = arith.maximumf %96, %92 : vector<64x4xf32>
    %102 = arith.maximumf %101, %100 : vector<64x4xf32>
    %103 = arith.truncf %102 : vector<64x4xf32> to vector<64x4xbf16>
    %c0_41 = arith.constant 0 : index
    %c0_42 = arith.constant 0 : index
    %104 = vector.load %arg10[%c0_41, %c0_42] : memref<4x32xbf16, #tpu.memory_space<vmem>>, vector<4x32xbf16>
    %cst_43 = arith.constant dense<0.000000e+00> : vector<64x32xf32>
    %105 = tpu.matmul %103, %104, %cst_43 {dimension_numbers = #tpu.dot_dimension_numbers<[1], [0], [0], [1], [0, 0, 1, 1], [], []>} : vector<64x4xbf16>, vector<4x32xbf16>, vector<64x32xf32> -> vector<64x32xf32>
    %c0_44 = arith.constant 0 : index
    %c0_45 = arith.constant 0 : index
    %106 = vector.load %arg11[%c0_44, %c0_45] : memref<1x32xf32, #tpu.memory_space<vmem>>, vector<1x32xf32>
    %107 = vector.broadcast %106 : vector<1x32xf32> to vector<64x32xf32>
    %108 = arith.addf %105, %107 : vector<64x32xf32>
    %cst_46 = arith.constant 0.000000e+00 : f32
    %109 = vector.broadcast %cst_46 : f32 to vector<64x32xf32>
    %110 = arith.maximumf %108, %109 : vector<64x32xf32>
    %111 = arith.truncf %110 : vector<64x32xf32> to vector<64x32xbf16>
    %112 = tpu.concatenate %30, %51, %91, %111 in 1 : vector<64x64xbf16>, vector<64x64xbf16>, vector<64x96xbf16>, vector<64x32xbf16> -> vector<64x256xbf16>
    %c0_47 = arith.constant 0 : index
    %c0_48 = arith.constant 0 : index
    %113 = vector.load %arg12[%c0_47, %c0_48] : memref<64x256xbf16, #tpu.memory_space<vmem>>, vector<64x256xbf16>
    tpu.vector_store %arg12[%c0_47, %c0_48], %112 {strides = array<i32>} : memref<64x256xbf16, #tpu.memory_space<vmem>>, vector<64x256xbf16>,
    return
  }
  func.func @transform_0(%arg0: i32) -> (i32, i32) {
    %c0_i32 = arith.constant 0 : i32
    %c0_i32_0 = arith.constant 0 : i32
    return %arg0, %c0_i32 : i32, i32
  }
  func.func @transform_1(%arg0: i32) -> (i32, i32) {
    %c0_i32 = arith.constant 0 : i32
    %c0_i32_0 = arith.constant 0 : i32
    %c0_i32_1 = arith.constant 0 : i32
    return %c0_i32, %c0_i32_0 : i32, i32
  }
  func.func @transform_2(%arg0: i32) -> (i32, i32) {
    %c0_i32 = arith.constant 0 : i32
    %c0_i32_0 = arith.constant 0 : i32
    %c0_i32_1 = arith.constant 0 : i32
    return %c0_i32, %c0_i32_0 : i32, i32
  }
  func.func @transform_3(%arg0: i32) -> (i32, i32) {
    %c0_i32 = arith.constant 0 : i32
    %c0_i32_0 = arith.constant 0 : i32
    %c0_i32_1 = arith.constant 0 : i32
    return %c0_i32, %c0_i32_0 : i32, i32
  }
  func.func @transform_4(%arg0: i32) -> (i32, i32) {
    %c0_i32 = arith.constant 0 : i32
    %c0_i32_0 = arith.constant 0 : i32
    %c0_i32_1 = arith.constant 0 : i32
    return %c0_i32, %c0_i32_0 : i32, i32
  }
  func.func @transform_5(%arg0: i32) -> (i32, i32) {
    %c0_i32 = arith.constant 0 : i32
    %c0_i32_0 = arith.constant 0 : i32
    %c0_i32_1 = arith.constant 0 : i32
    return %c0_i32, %c0_i32_0 : i32, i32
  }
  func.func @transform_6(%arg0: i32) -> (i32, i32) {
    %c0_i32 = arith.constant 0 : i32
    %c0_i32_0 = arith.constant 0 : i32
    %c0_i32_1 = arith.constant 0 : i32
    return %c0_i32, %c0_i32_0 : i32, i32
  }
  func.func @transform_7(%arg0: i32) -> (i32, i32) {
    %c0_i32 = arith.constant 0 : i32
    %c0_i32_0 = arith.constant 0 : i32
    %c0_i32_1 = arith.constant 0 : i32
    return %c0_i32, %c0_i32_0 : i32, i32
  }
  func.func @transform_8(%arg0: i32) -> (i32, i32) {
    %c0_i32 = arith.constant 0 : i32
    %c0_i32_0 = arith.constant 0 : i32
    %c0_i32_1 = arith.constant 0 : i32
    return %c0_i32, %c0_i32_0 : i32, i32
  }
  func.func @transform_9(%arg0: i32) -> (i32, i32) {
    %c0_i32 = arith.constant 0 : i32
    %c0_i32_0 = arith.constant 0 : i32
    %c0_i32_1 = arith.constant 0 : i32
    return %c0_i32, %c0_i32_0 : i32, i32
  }
  func.func @transform_10(%arg0: i32) -> (i32, i32) {
    %c0_i32 = arith.constant 0 : i32
    %c0_i32_0 = arith.constant 0 : i32
    %c0_i32_1 = arith.constant 0 : i32
    return %c0_i32, %c0_i32_0 : i32, i32
  }
  func.func @transform_11(%arg0: i32) -> (i32, i32) {
    %c0_i32 = arith.constant 0 : i32
    %c0_i32_0 = arith.constant 0 : i32
    return %arg0, %c0_i32 : i32, i32
  }
}

</mosaic_0001>

<bundles_post_ra>
// kernel: tpu_custom_call.1
= control target key start
LH: loop header
LB: loop body
LE: loop exit
PB: predicated region body
PF: predicated region fallthrough
CT: control target
= control target key end

     0   :  { %s3520_s0 = inlined_call_operand.vmem [shape: bf16[512,4], index: 0, kind: input, shape index: {}]   ;;  %s3521_s1 = inlined_call_operand.vmem [shape: bf16[4,192], index: 1, kind: input, shape index: {}]   ;;  %s3522_s2 = inlined_call_operand.vmem [shape: f32[1,192], index: 2, kind: input, shape index: {}]   ;;  %s3523_s3 = inlined_call_operand.vmem [shape: bf16[192,64], index: 3, kind: input, shape index: {}]   ;;  %s3524_s4 = inlined_call_operand.vmem [shape: f32[1,64], index: 4, kind: input, shape index: {}]   ;;  %s3525_s5 = inlined_call_operand.vmem [shape: bf16[192,96], index: 5, kind: input, shape index: {}]   ;;  %s3526_s6 = inlined_call_operand.vmem [shape: f32[1,96], index: 6, kind: input, shape index: {}]   ;;  %s3527_s7 = inlined_call_operand.vmem [shape: bf16[288,96], index: 7, kind: input, shape index: {}]   ;;  %s3528_s8 = inlined_call_operand.vmem [shape: f32[1,96], index: 8, kind: input, shape index: {}]   ;;  %s3529_s9 = inlined_call_operand.vmem [shape: bf16[4,32], index: 9, kind: input, shape index: {}]   ;;  %s3530_s10 = inlined_call_operand.vmem [shape: f32[1,32], index: 10, kind: input, shape index: {}]   ;;  %s3531_s11 = inlined_call_operand.hbm [shape: bf16[512,256], index: 11, kind: output, shape index: {}]  }
   0x1   :  { %3534 = sst [smem:[#allocation5_spill]] %s3520_s0 }
   0x2   :  { %16 = vsyncpa [#allocation3], 0 }
   0x3   :  { %18 = vsyncpa [#allocation3 + $0x1], 0  ;;  %s2559_s17 = smov 0   ;;  %s2561_s18 = smov 0  }
   0x4   :  { %s2563_s19 = smov 0   ;;  %s2565_s20 = smov 0  }
   0x5 LB: > { %s2580_s21 = sadd.s32 4294967295, %s2493_s20   ;;  %s2033_s22 = sadd.s32 4294967294, %s2493_s20   ;;  %s2493_s20 = sphi %s2565_s20, %s3558_s20   ;;  %s2489_s19 = sphi %s2563_s19, %s3557_s19   ;;  %s2485_s18 = sphi %s2561_s18, %s3556_s18   ;;  %s2481_s17 = sphi %s2559_s17, %s3555_s17  }
   0x6   : > { %s2584_s23 = sadd.s32 1, %s2493_s20   ;;  %s267_s24 = sadd.s32 1, %s2489_s19 }
   0x7   : > { %s264_s25 = ssub.s32 %s2493_s20, %s2584_s23  ;;  %p277_p0 = scmp.ne.s32.totalorder %s2489_s19, %s2485_s18 }
   0x8   : > { %p265_p1 = scmp.eq.s32.totalorder %s264_s25, 0  ;;  %p278_p2 = scmp.eq.s32.totalorder %s2580_s21, 7 }
   0x9   : > { %p283_p3 = scmp.ne.s32.totalorder %s2485_s18, %s2481_s17  ;;  %p284_p4 = scmp.eq.s32.totalorder %s2033_s22, 7 }
   0xa   : > { %s2595_s26 = scalar_select %p265_p1, %s2489_s19, %s267_s24  }
   0xb   : > { %p2597_p5 = por %p278_p2, %p277_p0  ;;  %p2601_p6 = por %p284_p4, %p283_p3 }
   0xc   : > { %p2036_p7 = scmp.ge.s32.totalorder %s2493_s20, 1  ;;  %p341_p8 = scmp.lt.s32.totalorder %s2493_s20, 9 }
   0xe   : > { %p342_p9 = pnand %p2036_p7, %p341_p8 }
   0xf   : > { %s2038_s12 = sshll.u32 (!%p342_p9), %s2580_s21, 3  ;;  %s3537_s0 = sld [smem:[#allocation5_spill]] (!%p342_p9) }
  0x10   : > { %345 = sbr.rel (%p342_p9) target bundleno = 778 (0x30a), region = 64  ;;  %p382_p10 = scmp.lt.s32.totalorder (!%p342_p9), %s2038_s12, 63 }
  0x11   : > { %s3554_s14 = smov (!%p342_p9), 64   ;;  %s2301_s30 = sshll.u32 (!%p342_p9), %s2580_s21, 6 }
  0x12   : > { %s1967_s15 = scalar_lea.hbm (!%p342_p9), %s3531_s11, %s2301_s30 }
  0x13   : > { %s1970_s24 = sshll.u32 (!%p342_p9), %s1967_s15, 4  ;;  %s1971_s24 = int_to_ptr.hbm [resolvable:$true] %s1970_s24 }
  0x15   : > { %v518_v0 = vld [vmem:[%s3521_s1] sm:$0xf]  ;;  %s3560_s12 = smov (!%p382_p10, %s2038_s12), 63  ;;  %vm562_vm0 = vcmask 1041408   ;;  %vm549_vm1 = vcmask 31744   ;;  %v2281_v9 = vld [vmem:[%s3525_s5 + $0x58] sm:$0xff]  ;;  %v397_v17 = vlaneseq }
  0x16   : > { %546 = vst [vmem:[#allocation1] ss:$4 sm:$0xff] %v518_v0  ;;  %s2039_s13 = sshll.u32 %s3560_s12, 2  ;;  %v2280_v10 = vld [vmem:[%s3525_s5 + $0x50] sm:$0xff]  ;;  %v2279_v11 = vld [vmem:[%s3525_s5 + $0x48] sm:$0xff]  ;;  %v2278_v12 = vld [vmem:[%s3525_s5 + $0x40] sm:$0xff] }
  0x17   : > { %s2614_s16 = scalar_lea.vmem %s3537_s0, %s2039_s13  ;;  %v519_v13 = vld [vmem:[%s3522_s2] sm:$0x3]  ;;  %v2650_v22 = vshrl.u32 %v397_v17, 7  ;;  %s3532_s0 = smov 64   ;;  %vm763_vm5 = vcmask 523264   ;;  %vm1352_vm13 = vcmask 785408  }
  0x18   : > { %v2254_v4 = vld [vmem:[%s2614_s16] sm:$0xff]  ;;  %v2256_v5 = vld [vmem:[%s2614_s16 + $0x10] sm:$0xff]  ;;  %v2255_v7 = vld [vmem:[%s2614_s16 + $0x8] sm:$0xff]  ;;  %v2645_v15 = vperm.slane %v519_v13, 1  ;;  %v2655_v26 = vperm.slane %v519_v13, 0  ;;  %s2496_s13 = smov 96  }
  0x19   : > { %v2257_v8 = vld [vmem:[%s2614_s16 + $0x18] sm:$0xff]  ;;  %vm689_vm2 = vcmp.lt.s32.totalorder %v2650_v22, 1  ;;  %v399_v32 = vadd.s32 8, %v2650_v22  ;;  %vm730_vm3 = vcmp.lt.s32.totalorder %v2650_v22, 7  ;;  %vm1529_vm14 = vcmask 261120   ;;  %s2451_s12 = scalar_lea.hbm %s3531_s11, 512 }
  0x1b   : > { %v417_v43 = vand.u32 15, %v399_v32 }
  0x1d   : > { %v548_v1 = vld.sshfl [vmem:[#allocation1 + $0x8] sm:$0xff pattern:$0x73625140]  ;;  %v547_v2 = vld.sshfl [vmem:[#allocation1] sm:$0xff pattern:$0x73625140] }
  0x1e   : > { %v565_v3 = vsel %vm562_vm0, %v548_v1, 0  ;;  %v563_v6 = vsel %vm562_vm0, %v547_v2, 0  ;;  %vm2691_vm4 = vcmp.eq.s32.totalorder %v417_v43, 15 }
  0x1f   : > { %603 = vmatpush.bf16.msra.mxu1 %v565_v3  ;;  %2303 = vmatpush.bf16.msra.mxu2 %v565_v3 }
  0x20   : > { %574 = vmatpush.bf16.msra.mxu0 %v563_v6  ;;  %2302 = vmatpush.bf16.msra.mxu3 %v563_v6  ;;  %v401_v6 = vadd.s32 24, %v2650_v22 }
  0x22   : > { %2060 = vmatmul.msk.bf16.vlgmr.msra.gmra.mxu1 %vm549_vm1, %v2254_v4  ;;  %2062 = vmatmul.msk.bf16.vlgmr.msra.gmra.mxu2 %vm549_vm1, %v2256_v5 }
  0x23   : > { %2056 = vmatmul.msk.bf16.vlgmr.msra.gmra.mxu0 %vm549_vm1, %v2254_v4  ;;  %2058 = vmatmul.msk.bf16.vlgmr.msra.gmra.mxu3 %vm549_vm1, %v2256_v5 }
  0x24   : > { %1207 = vmatpush.bf16.msrb.mxu1 %v2281_v9 }
  0x28   : > { %1208 = vmatpush.bf16.msrb.mxu1 %v2280_v10 }
  0x2c   : > { %1209 = vmatpush.bf16.msrb.mxu1 %v2279_v11 }
  0x30   : > { %1210 = vmatpush.bf16.msrb.mxu1 %v2278_v12 }
  0x32   : > { %2061 = vmatmul.msk.bf16.gmra.mxu1 %vm549_vm1, %v2255_v7  ;;  %2063 = vmatmul.msk.bf16.gmra.mxu2 %vm549_vm1, %v2257_v8 }
  0x33   : > { %2057 = vmatmul.msk.bf16.gmra.mxu0 %vm549_vm1, %v2255_v7  ;;  %2059 = vmatmul.msk.bf16.gmra.mxu3 %vm549_vm1, %v2257_v8 }
  0x9f   : > { %v605_v14 = vpop.f32.mrf.mxu1 }
  0xa0   : > { %v2647_v16 = vpop.f32.mrf.mxu0  ;;  %v606_v18 = vadd.f32 %v605_v14, %v2645_v15 }
  0xa1   : > { %v577_v10 = vadd.f32 %v2647_v16, %v2655_v26 }
  0xa2   : > { %v2652_v23 = vmax.f32 %v606_v18, 0.0  ;;  %v431_v18 = vand.u32 15, %v401_v6 }
  0xa3   : > { %v2734_v16 = vmax.f32 %v577_v10, 0.0 }
  0xa4   : > { %v966_v29 = vrot.slane %v2652_v23, 7  ;;  %v990_v56 = vrot.slane %v2652_v23, 1  ;;  %vm2755_vm6 = vcmp.eq.s32.totalorder %v431_v18, 15 }
  0xa5   : > { %v615_v19 = vpop.f32.mrf.mxu2 }
  0xa6   : > { %v586_v20 = vpop.f32.mrf.mxu3  ;;  %v616_v27 = vadd.f32 %v615_v19, %v2645_v15 }
  0xa7   : > { %v607_v21 = vpop.f32.mrf.mxu1  ;;  %v587_v5 = vadd.f32 %v586_v20, %v2655_v26 }
  0xa8   : > { %v608_v24 = vadd.f32 %v607_v21, %v2645_v15  ;;  %v578_v25 = vpop.f32.mrf.mxu0  ;;  %v2663_v35 = vmax.f32 %v616_v27, 0.0 }
  0xa9   : > { %v579_v34 = vadd.f32 %v578_v25, %v2655_v26  ;;  %v2727_v14 = vmax.f32 %v587_v5, 0.0  ;;  %v2262_v5 = vld [vmem:[%s3523_s3 + $0x20] sm:$0xff] }
  0xaa   : > { %v628_v28 = vmax.f32 %v608_v24, 0.0  ;;  %v970_v46 = vrot.slane %v2663_v35, 7  ;;  %v994_v19 = vrot.slane %v2663_v35, 1 }
  0xab   : > { %v2676_v44 = vmax.f32 %v579_v34, 0.0 }
  0xac   : > { %v967_v30 = vrot.slane %v628_v28, 7  ;;  %v2347_v31 = vpack.i.bf16 %v628_v28, %v2652_v23  ;;  %v991_v50 = vrot.slane %v628_v28, 1  ;;  %v2270_v23 = vld [vmem:[%s3525_s5] sm:$0xff] }
  0xad   : > { %v617_v33 = vpop.f32.mrf.mxu2 }
  0xae   : > { %v618_v36 = vadd.f32 %v617_v33, %v2645_v15  ;;  %2348 = vrot.lane.b32.xlu0 %v2347_v31, %s3532_s0  ;;  %v588_v37 = vpop.f32.mrf.mxu3  ;;  %v2671_v38 = vsel %vm689_vm2, %v966_v29, %v967_v30  ;;  %v1004_v0 = vsel %vm730_vm3, %v990_v56, %v991_v50 }
  0xaf   : > { %v610_v39 = vpop.f32.mrf.mxu1  ;;  %v589_v27 = vadd.f32 %v588_v37, %v2655_v26 }
  0xb0   : > { %v2673_v40 = vmax.f32 %v618_v36, 0.0  ;;  %v611_v41 = vadd.f32 %v610_v39, %v2645_v15  ;;  %v581_v42 = vpop.f32.mrf.mxu0 }
  0xb1   : > { %v582_v45 = vadd.f32 %v581_v42, %v2655_v26  ;;  %v2768_v42 = vmax.f32 %v589_v27, 0.0  ;;  %v2268_v27 = vld [vmem:[%s3523_s3 + $0x50] sm:$0xff] }
  0xb2   : > { %v971_v47 = vrot.slane %v2673_v40, 7  ;;  %v2681_v48 = vmax.f32 %v611_v41, 0.0  ;;  %v2357_v49 = vpack.i.bf16 %v2673_v40, %v2663_v35 }
  0xb3   : > { %v2685_v51 = vmax.f32 %v582_v45, 0.0 }
  0xb4   : > { %v968_v52 = vrot.slane %v2681_v48, 7  ;;  %v992_v53 = vrot.slane %v2681_v48, 1  ;;  %2358 = vrot.lane.b32.xlu1 %v2357_v49, %s3532_s0  ;;  %v2697_v55 = vsel %vm689_vm2, %v970_v46, %v971_v47 }
  0xb5   : > { %v620_v57 = vpop.f32.mrf.mxu2  ;;  %v2367_v58 = vpack.i.bf16 %v2685_v51, %v2676_v44 }
  0xb6   : > { %v621_v59 = vadd.f32 %v620_v57, %v2645_v15  ;;  %v1003_v60 = vsel %vm730_vm3, %v991_v50, %v992_v53  ;;  %v591_v61 = vpop.f32.mrf.mxu3  ;;  %v2707_v62 = vsel %vm689_vm2, %v967_v30, %v968_v52  ;;  %v2276_v57 = vld [vmem:[%s3525_s5 + $0x30] sm:$0xff] }
  0xb7   : > { %v612_v63 = vpop.f32.mrf.mxu1  ;;  %v1007_v1 = vsel %vm2691_vm4, 0.0, %v1003_v60  ;;  %2368 = vrot.lane.b32.xlu2 %v2367_v58, %s3532_s0  ;;  %v592_v32 = vadd.f32 %v591_v61, %v2655_v26  ;;  %v2264_v58 = vld [vmem:[%s3523_s3 + $0x30] sm:$0xff] }
  0xb8   : > { %v613_v2 = vadd.f32 %v612_v63, %v2645_v15  ;;  %v1055_v3 = vpack.c.bf16 %v1007_v1, %v1004_v0  ;;  %v583_v4 = vpop.f32.mrf.mxu0  ;;  %v2719_v7 = vmax.f32 %v621_v59, 0.0  ;;  %v995_v59 = vrot.slane %v2673_v40, 1  ;;  %v2275_v63 = vld [vmem:[%s3525_s5 + $0x28] sm:$0xff] }
  0xb9   : > { %v584_v9 = vadd.f32 %v583_v4, %v2655_v26  ;;  %v2770_v43 = vmax.f32 %v592_v32, 0.0  ;;  %v2263_v0 = vld [vmem:[%s3523_s3 + $0x28] sm:$0xff]  ;;  %v2258_v32 = vld [vmem:[%s3523_s3] sm:$0xff] }
  0xba   : > { %v632_v8 = vmax.f32 %v613_v2, 0.0  ;;  %2164 = vmatmul.msk.bf16.vlgmr.msrb.gmra.mxu1 %vm763_vm5, %v1055_v3  ;;  %v972_v11 = vrot.slane %v2719_v7, 7  ;;  %v996_v60 = vrot.slane %v2719_v7, 1  ;;  %v2274_v2 = vld [vmem:[%s3525_s5 + $0x20] sm:$0xff]  ;;  %v1000_v3 = vsel %vm730_vm3, %v994_v19, %v995_v59 }
  0xbb   : > { %v2732_v24 = vmax.f32 %v584_v9, 0.0  ;;  %v2382_v50 = vpack.i.bf16 %v2770_v43, %v2768_v42  ;;  %v2272_v9 = vld [vmem:[%s3525_s5 + $0x10] sm:$0xff] }
  0xbc   : > { %v969_v12 = vrot.slane %v632_v8, 7  ;;  %v2352_v13 = vpack.i.bf16 %v632_v8, %v2681_v48  ;;  %v993_v20 = vrot.slane %v632_v8, 1  ;;  %v2751_v33 = vsel %vm689_vm2, %v971_v47, %v972_v11 }
  0xbd   : > { %v622_v17 = vpop.f32.mrf.mxu2  ;;  %v999_v40 = vsel %vm730_vm3, %v995_v59, %v996_v60  ;;  %v405_v8 = vadd.s32 56, %v2650_v22 }
  0xbe   : > { %v623_v21 = vadd.f32 %v622_v17, %v2645_v15  ;;  %2353 = vrot.lane.b32.xlu0 %v2352_v13, %s3532_s0  ;;  %v593_v25 = vpop.f32.mrf.mxu3  ;;  %v2740_v30 = vsel %vm689_vm2, %v968_v52, %v969_v12  ;;  %v2747_v15 = vsel %vm689_vm2, %v969_v12, %v970_v46  ;;  %v1001_v39 = vsel %vm730_vm3, %v993_v20, %v994_v19  ;;  %v2277_v52 = vld [vmem:[%s3525_s5 + $0x38] sm:$0xff]  ;;  %v2271_v12 = vld [vmem:[%s3525_s5 + $0x8] sm:$0xff] }
  0xbf   : > { %v594_v28 = vadd.f32 %v593_v25, %v2655_v26  ;;  %v2377_v26 = vpack.i.bf16 %v2727_v14, %v2732_v24  ;;  %v1002_v47 = vsel %vm730_vm3, %v992_v53, %v993_v20  ;;  %v1009_v48 = vsel %vm2755_vm6, 0.0, %v1001_v39  ;;  %v2265_v53 = vld [vmem:[%s3523_s3 + $0x38] sm:$0xff]  ;;  %1174 = vmatpush.bf16.msrb.mxu0 %v2277_v52  ;;  %v2260_v25 = vld [vmem:[%s3523_s3 + $0x10] sm:$0xff] }
  0xc0   : > { %v2742_v31 = vmax.f32 %v623_v21, 0.0  ;;  %v1057_v49 = vpack.c.bf16 %v1009_v48, %v1002_v47  ;;  %892 = vmatpush.bf16.msrb.mxu2 %v2265_v53  ;;  %v2261_v21 = vld [vmem:[%s3523_s3 + $0x18] sm:$0xff] }
  0xc1   : > { %v2753_v34 = vmax.f32 %v594_v28, 0.0  ;;  %v2259_v28 = vld [vmem:[%s3523_s3 + $0x8] sm:$0xff] }
  0xc2   : > { %v973_v36 = vrot.slane %v2742_v31, 7  ;;  %v2362_v37 = vpack.i.bf16 %v2742_v31, %v2719_v7  ;;  %v2273_v7 = vld [vmem:[%s3525_s5 + $0x18] sm:$0xff]  ;;  %v997_v10 = vrot.slane %v2742_v31, 1  ;;  %v2267_v31 = vld [vmem:[%s3523_s3 + $0x48] sm:$0xff] }
  0xc3   : > { %v2372_v41 = vpack.i.bf16 %v2753_v34, %v2734_v16  ;;  %1175 = vmatpush.bf16.msrb.mxu0 %v2276_v57 }
  0xc4   : > { %2363 = vrot.lane.b32.xlu1 %v2362_v37, %s3532_s0  ;;  %v2777_v45 = vsel %vm689_vm2, %v973_v36, %v966_v29  ;;  %v2781_v46 = vsel %vm689_vm2, %v972_v11, %v973_v36  ;;  %v403_v29 = vadd.s32 40, %v2650_v22  ;;  %893 = vmatpush.bf16.msrb.mxu2 %v2264_v58  ;;  %v459_v11 = vand.u32 15, %v405_v8  ;;  %v2266_v36 = vld [vmem:[%s3523_s3 + $0x40] sm:$0xff] }
  0xc5   : > { %2373 = vrot.lane.b32.xlu2 %v2372_v41, %s3532_s0  ;;  %v1005_v17 = vsel %vm730_vm3, %v997_v10, %v990_v56  ;;  %v998_v18 = vsel %vm730_vm3, %v996_v60, %v997_v10  ;;  %v2269_v56 = vld [vmem:[%s3523_s3 + $0x58] sm:$0xff]  ;;  %v410_v41 = vand.u32 15, %v2650_v22 }
  0xc6   : > { %2378 = vrot.lane.b32.xlu0 %v2377_v26, %s3532_s0  ;;  %v445_v61 = vand.u32 15, %v403_v29  ;;  %vm2842_vm8 = vcmp.eq.s32.totalorder %v459_v11, 15  ;;  %925 = vmatpush.bf16.msrb.mxu3 %v2269_v56 }
  0xc7   : > { %1176 = vmatpush.bf16.msrb.mxu0 %v2275_v63  ;;  %v1013_v19 = vsel %vm2842_vm8, 0.0, %v1005_v17  ;;  %vm2886_vm9 = vcmp.eq.s32.totalorder %v410_v41, 0 }
  0xc8   : > { %vm2814_vm7 = vcmp.eq.s32.totalorder %v445_v61, 15  ;;  %894 = vmatpush.bf16.msrb.mxu2 %v2263_v0  ;;  %v1061_v20 = vpack.c.bf16 %v1013_v19, %v998_v18  ;;  %v982_v63 = vsel %vm2886_vm9, 0.0, %v2777_v45 }
  0xc9   : > { %v1011_v4 = vsel %vm2814_vm7, 0.0, %v999_v40 }
  0xca   : > { %2165 = vmatmul.msk.bf16.gmra.mxu1 %vm763_vm5, %v1057_v49  ;;  %v1059_v6 = vpack.c.bf16 %v1011_v4, %v1000_v3  ;;  %926 = vmatpush.bf16.msrb.mxu3 %v2268_v27  ;;  %v402_v49 = vadd.s32 32, %v2650_v22 }
  0xcb   : > { %1177 = vmatpush.bf16.msrb.mxu0 %v2274_v2 }
  0xcc   : > { %2383 = vrot.lane.b32.xlu1 %v2382_v50, %s3532_s0  ;;  %895 = vmatpush.bf16.msrb.mxu2 %v2262_v5  ;;  %v438_v0 = vand.u32 15, %v402_v49 }
  0xce   : > { %927 = vmatpush.bf16.msrb.mxu3 %v2267_v31  ;;  %vm2923_vm10 = vcmp.eq.s32.totalorder %v438_v0, 0 }
  0xcf   : > { %1178 = vmatpush.bf16.msrb.mxu0 %v2273_v7  ;;  %v986_v27 = vsel %vm2923_vm10, 0.0, %v2747_v15 }
  0xd0   : > { %896 = vmatpush.bf16.msrb.mxu2 %v2261_v21  ;;  %v389_v21 = vld [vmem:[%s2614_s16] sm:$0xff]  }
  0xd2   : > { %928 = vmatpush.bf16.msrb.mxu3 %v2266_v36 }
  0xd3   : > { %1179 = vmatpush.bf16.msrb.mxu0 %v2272_v9 }
  0xd4   : > { %897 = vmatpush.bf16.msrb.mxu2 %v2260_v25  ;;  %v400_v25 = vadd.s32 16, %v2650_v22 }
  0xd6   : > { %v424_v41 = vand.u32 15, %v400_v25 }
  0xd7   : > { %1180 = vmatpush.bf16.msrb.mxu0 %v2271_v12 }
  0xd8   : > { %898 = vmatpush.bf16.msrb.mxu2 %v2259_v28  ;;  %vm2952_vm11 = vcmp.eq.s32.totalorder %v424_v41, 0 }
  0xda   : > { %2166 = vmatmul.msk.bf16.gmra.mxu1 %vm763_vm5, %v1059_v6 }
  0xdb   : > { %1181 = vmatpush.bf16.msrb.mxu0 %v2270_v23  ;;  %v396_v23 = vld [vmem:[%s2614_s16 + $0x1c] sm:$0xf] }
  0xdc   : > { %899 = vmatpush.bf16.msrb.mxu2 %v2258_v32  ;;  %v2943_v32 = vunpack.c.l.bf16 %v389_v21  ;;  %v2945_v36 = vunpack.c.l.bf16 %v396_v23 }
  0xde   : > { %v1653_v15 = vrot.slane %v2943_v32, 7 }
  0xea   : > { %2167 = vmatmul.msk.bf16.gmra.mxu1 %vm763_vm5, %v1061_v20 }
 0x111   : > { %v2369_v37 = vpop.permute.xlu2 %2368 }
 0x112   : > { %v2371_v26 = vunpack.i.h.bf16 %v2369_v37  ;;  %v2370_v39 = vunpack.i.l.bf16 %v2369_v37 }
 0x114   : > { %v2883_v47 = vrot.slane %v2371_v26, 1  ;;  %v723_v48 = vrot.slane %v2370_v39, 1  ;;  %v682_v53 = vrot.slane %v2370_v39, 7  ;;  %v404_v39 = vadd.s32 48, %v2650_v22 }
 0x116   : > { %v736_v29 = vsel %vm730_vm3, %v723_v48, %v2883_v47  ;;  %v452_v49 = vand.u32 15, %v404_v39 }
 0x117   : > { %v756_v4 = vsel %vm2691_vm4, 0.0, %v736_v29  ;;  %v683_v29 = vrot.slane %v2371_v26, 7 }
 0x118   : > { %vm2963_vm12 = vcmp.eq.s32.totalorder %v452_v49, 0 }
 0x11f   : > { %v2893_v52 = vpop.permute.xlu2 %2373 }
 0x120   : > { %v2349_v57 = vpop.permute.xlu0 %2348  ;;  %v2376_v58 = vunpack.i.h.bf16 %v2893_v52  ;;  %v2375_v59 = vunpack.i.l.bf16 %v2893_v52 }
 0x121   : > { %v2351_v60 = vunpack.i.h.bf16 %v2349_v57  ;;  %v2350_v61 = vunpack.i.l.bf16 %v2349_v57 }
 0x122   : > { %v2902_v40 = vrot.slane %v2376_v58, 7  ;;  %v681_v2 = vrot.slane %v2375_v59, 7  ;;  %v2904_v3 = vrot.slane %v2375_v59, 1 }
 0x123   : > { %v1046_v5 = vsel %vm763_vm5, %v982_v63, %v2350_v61  ;;  %v1047_v6 = vsel %vm763_vm5, %v2671_v38, %v2351_v60  ;;  %v984_v63 = vsel %vm2952_vm11, 0.0, %v2707_v62 }
 0x124   : > { %v1054_v7 = vpack.c.bf16 %v1047_v6, %v1046_v5  ;;  %v737_v45 = vsel %vm730_vm3, %v2904_v3, %v723_v48  ;;  %v696_v8 = vsel %vm689_vm2, %v681_v2, %v682_v53  ;;  %v697_v9 = vsel %vm689_vm2, %v2902_v40, %v681_v2  ;;  %v2973_v5 = vld [vmem:[%s2614_s16 + $0x8] sm:$0xff]  }
 0x125   : > { %v714_v10 = vsel %vm2886_vm9, 0.0, %v697_v9  ;;  %v765_v11 = vsel %vm763_vm5, %v696_v8, %v2676_v44  ;;  %v773_v12 = vpack.c.bf16 %v756_v4, %v737_v45  ;;  %v1660_v48 = vrot.slane %v2945_v36, 7 }
 0x126   : > { %v2359_v17 = vpop.permute.xlu1 %2358  ;;  %1182 = vmatmul.bf16.vlgmr.msrb.gmra.mxu0 %v1054_v7  ;;  %v764_v18 = vsel %vm763_vm5, %v714_v10, %v2734_v16  ;;  %v695_v4 = vsel %vm689_vm2, %v682_v53, %v683_v29  ;;  %v2975_v6 = vunpack.c.h.bf16 %v389_v21  ;;  %v2978_v45 = vunpack.c.l.bf16 %v2973_v5 }
 0x127   : > { %v2361_v19 = vunpack.i.h.bf16 %v2359_v17  ;;  %v2360_v20 = vunpack.i.l.bf16 %v2359_v17  ;;  %v772_v56 = vpack.c.bf16 %v765_v11, %v764_v18  ;;  %2112 = vmatmul.msk.bf16.vlgmr.msrb.gmra.mxu3 %vm763_vm5, %v773_v12  ;;  %v1668_v61 = vsel %vm689_vm2, %v1660_v48, %v1653_v15  ;;  %v1721_v18 = vld [vmem:[%s3529_s9] sm:$0x3] }
 0x128   : > { %v1669_v62 = vsel %vm2886_vm9, %v2943_v32, %v1668_v61  ;;  %v1654_v8 = vrot.slane %v2975_v6, 7  ;;  %v988_v53 = vsel %vm2963_vm12, 0.0, %v2751_v33  ;;  %v1678_v10 = vrot.slane %v2975_v6, 1 }
 0x129   : > { %900 = vmatmul.bf16.vlgmr.msrb.gmra.mxu2 %v772_v56  ;;  %v2937_v28 = vsel %vm763_vm5, %v986_v27, %v2360_v20  ;;  %v2941_v31 = vsel %vm763_vm5, %v2697_v55, %v2361_v19  ;;  %v1679_v11 = vrot.slane %v2978_v45, 1  ;;  %v1677_v20 = vrot.slane %v2943_v32, 1 }
 0x12a   : > { %v1058_v37 = vpack.c.bf16 %v2941_v31, %v2937_v28  ;;  %v1667_v19 = vsel %vm689_vm2, %v1653_v15, %v1654_v8  ;;  %v1739_v33 = vsel %vm562_vm0, %v1721_v18, 0  ;;  %v1701_v56 = vmax.f32 %v1669_v62, %v2943_v32 }
 0x12b   : > { %v1690_v23 = vsel %vm730_vm3, %v1678_v10, %v1679_v11  ;;  %v1702_v25 = vmax.f32 %v1667_v19, %v2975_v6  ;;  %1748 = vmatpush.bf16.msra.mxu1 %v1739_v33 }
 0x130   : > { %v2354_v57 = vpop.permute.xlu0 %2353 }
 0x131   : > { %v2356_v59 = vunpack.i.h.bf16 %v2354_v57  ;;  %v2355_v60 = vunpack.i.l.bf16 %v2354_v57  ;;  %v1691_v57 = vsel %vm730_vm3, %v1677_v20, %v1678_v10 }
 0x133   : > { %v1048_v26 = vsel %vm763_vm5, %v984_v63, %v2355_v60  ;;  %v1049_v2 = vsel %vm763_vm5, %v2740_v30, %v2356_v59  ;;  %v716_v30 = vsel %vm2952_vm11, 0.0, %v695_v4  ;;  %v1694_v59 = vsel %vm2691_vm4, %v2975_v6, %v1690_v23 }
 0x134   : > { %v1056_v7 = vpack.c.bf16 %v1049_v2, %v1048_v26  ;;  %v766_v26 = vsel %vm763_vm5, %v716_v30, %v2685_v51  ;;  %v1709_v2 = vmax.f32 %v1701_v56, %v1691_v57  ;;  %v1710_v4 = vmax.f32 %v1702_v25, %v1694_v59 }
 0x135   : > { %v729_v59 = vrot.slane %v2376_v58, 1 }
 0x136   : > { %v2364_v9 = vpop.permute.xlu1 %2363  ;;  %1187 = vmatmul.bf16.gmra.mxu0 %v1056_v7  ;;  %v1717_v30 = vpack.c.bf16 %v1710_v4, %v1709_v2 }
 0x137   : > { %v2366_v12 = vunpack.i.h.bf16 %v2364_v9  ;;  %v2365_v17 = vunpack.i.l.bf16 %v2364_v9 }
 0x138   : > { %v2379_v21 = vpop.permute.xlu0 %2378  ;;  %2244 = vmatmul.msk.bf16.vlgmr.msra.gmra.mxu1 %vm549_vm1, %v1717_v30 }
 0x139   : > { %v2381_v27 = vunpack.i.h.bf16 %v2379_v21  ;;  %v2380_v39 = vunpack.i.l.bf16 %v2379_v21  ;;  %v1052_v41 = vsel %vm763_vm5, %v988_v53, %v2365_v17  ;;  %v1053_v15 = vsel %vm763_vm5, %v2781_v46, %v2366_v12 }
 0x13a   : > { %v1060_v49 = vpack.c.bf16 %v1053_v15, %v1052_v41 }
 0x13b   : > { %v726_v60 = vrot.slane %v2381_v27, 1  ;;  %v684_v61 = vrot.slane %v2380_v39, 7  ;;  %v725_v63 = vrot.slane %v2380_v39, 1 }
 0x13d   : > { %v694_v46 = vsel %vm689_vm2, %v683_v29, %v684_v61  ;;  %v734_v7 = vsel %vm730_vm3, %v725_v63, %v726_v60  ;;  %v735_v62 = vsel %vm730_vm3, %v2883_v47, %v725_v63  ;;  %v685_v47 = vrot.slane %v2381_v27, 7 }
 0x13e   : > { %v2384_v9 = vpop.permute.xlu1 %2383  ;;  %v767_v53 = vsel %vm763_vm5, %v694_v46, %v2732_v24  ;;  %v758_v10 = vsel %vm2755_vm6, 0.0, %v734_v7 }
 0x13f   : > { %v774_v12 = vpack.c.bf16 %v767_v53, %v766_v26  ;;  %v775_v17 = vpack.c.bf16 %v758_v10, %v735_v62  ;;  %v2386_v29 = vunpack.i.h.bf16 %v2384_v9  ;;  %v2385_v18 = vunpack.i.l.bf16 %v2384_v9  ;;  %v3077_v53 = vld [vmem:[%s3526_s6] ss:$0 sm:$0xff] }
 0x140   : > { %v693_v56 = vsel %vm689_vm2, %v684_v61, %v685_v47  ;;  %v738_v61 = vsel %vm730_vm3, %v729_v59, %v2904_v3 }
 0x141   : > { %905 = vmatmul.bf16.gmra.mxu2 %v774_v12  ;;  %2113 = vmatmul.msk.bf16.gmra.mxu3 %vm763_vm5, %v775_v17  ;;  %v728_v19 = vrot.slane %v2386_v29, 1  ;;  %v727_v21 = vrot.slane %v2385_v18, 1  ;;  %v686_v33 = vrot.slane %v2385_v18, 7  ;;  %v718_v41 = vsel %vm2923_vm10, 0.0, %v693_v56 }
 0x142   : > { %v687_v57 = vrot.slane %v2386_v29, 7  ;;  %v762_v52 = vsel %vm2842_vm8, 0.0, %v738_v61 }
 0x143   : > { %v732_v23 = vsel %vm730_vm3, %v727_v21, %v728_v19  ;;  %v692_v25 = vsel %vm689_vm2, %v685_v47, %v686_v33  ;;  %v733_v39 = vsel %vm730_vm3, %v726_v60, %v727_v21  ;;  %v731_v2 = vsel %vm730_vm3, %v728_v19, %v729_v59 }
 0x144   : > { %v760_v27 = vsel %vm2814_vm7, 0.0, %v732_v23  ;;  %v769_v28 = vsel %vm763_vm5, %v692_v25, %v2768_v42  ;;  %v691_v60 = vsel %vm689_vm2, %v686_v33, %v687_v57  ;;  %v690_v63 = vsel %vm689_vm2, %v687_v57, %v2902_v40  ;;  %v1212_v40 = vpop.f32.mrf.mxu1 }
 0x145   : > { %v777_v31 = vpack.c.bf16 %v760_v27, %v733_v39  ;;  %v720_v26 = vsel %vm2963_vm12, 0.0, %v691_v60  ;;  %v779_v3 = vpack.c.bf16 %v762_v52, %v731_v2  ;;  %v1655_v59 = vrot.slane %v2978_v45, 7 }
 0x146   : > { %1192 = vmatmul.bf16.gmra.mxu0 %v1058_v37  ;;  %v768_v37 = vsel %vm763_vm5, %v718_v41, %v2727_v14  ;;  %v770_v58 = vsel %vm763_vm5, %v720_v26, %v2770_v43 }
 0x147   : > { %v776_v15 = vpack.c.bf16 %v769_v28, %v768_v37  ;;  %v1648_v37 = vunpack.c.h.bf16 %v2973_v5 }
 0x149   : > { %v1656_v61 = vrot.slane %v1648_v37, 7  ;;  %v1680_v26 = vrot.slane %v1648_v37, 1 }
 0x14b   : > { %v1665_v52 = vsel %vm689_vm2, %v1655_v59, %v1656_v61 }
 0x14c   : > { %v1214_v46 = vpop.f32.mrf.mxu1 }
 0x151   : > { %910 = vmatmul.bf16.gmra.mxu2 %v776_v15  ;;  %2114 = vmatmul.msk.bf16.gmra.mxu3 %vm763_vm5, %v777_v31  ;;  %v393_v31 = vld [vmem:[%s2614_s16 + $0x10] sm:$0xff]  }
 0x152   : > { %v3103_v57 = vunpack.c.l.bf16 %v393_v31 }
 0x154   : > { %v1217_v7 = vpop.f32.mrf.mxu1  ;;  %v1681_v5 = vrot.slane %v3103_v57, 1 }
 0x156   : > { %1197 = vmatmul.bf16.gmra.mxu0 %v1060_v49  ;;  %v771_v49 = vsel %vm763_vm5, %v690_v63, %v2753_v34  ;;  %v1666_v63 = vsel %vm689_vm2, %v1654_v8, %v1655_v59 }
 0x157   : > { %v778_v4 = vpack.c.bf16 %v771_v49, %v770_v58  ;;  %v1671_v58 = vsel %vm2952_vm11, %v2978_v45, %v1666_v63 }
 0x158   : > { %v1703_v6 = vmax.f32 %v1671_v58, %v2978_v45 }
 0x15c   : > { %v1219_v62 = vpop.f32.mrf.mxu1 }
 0x161   : > { %915 = vmatmul.bf16.gmra.mxu2 %v778_v4  ;;  %2115 = vmatmul.msk.bf16.gmra.mxu3 %vm763_vm5, %v779_v3  ;;  %v1688_v3 = vsel %vm730_vm3, %v1680_v26, %v1681_v5  ;;  %v1704_v4 = vmax.f32 %v1665_v52, %v1648_v37 }
 0x164   : > { %v3072_v9 = vpop.f32.mrf.mxu1 }
 0x16c   : > { %v3080_v12 = vpop.f32.mrf.mxu1 }
 0x174   : > { %v3091_v27 = vpop.f32.mrf.mxu1 }
 0x17c   : > { %v3139_v45 = vpop.f32.mrf.mxu1 }
 0x1a3   : > { %v1183_v10 = vpop.f32.mrf.mxu0 }
 0x1a4   : > { %v1184_v30 = vadd.f32 %v3077_v53, %v1183_v10  ;;  %v1689_v10 = vsel %vm730_vm3, %v1679_v11, %v1680_v26 }
 0x1a6   : > { %v1213_v17 = vadd.f32 %v1212_v40, %v1184_v30  ;;  %v1696_v30 = vsel %vm2755_vm6, %v1648_v37, %v1688_v3  ;;  %v395_v3 = vld [vmem:[%s2614_s16 + $0x18] sm:$0xf] }
 0x1a8   : > { %v3083_v19 = vmax.f32 %v1213_v17, 0.0 }
 0x1aa   : > { %v3087_v23 = vpop.f32.mrf.mxu3  ;;  %v1240_v56 = vrot.slane %v3083_v19, 7  ;;  %v1264_v17 = vrot.slane %v3083_v19, 1 }
 0x1ab   : > { %v1185_v29 = vpop.f32.mrf.mxu0 }
 0x1ac   : > { %v1186_v18 = vadd.f32 %v3077_v53, %v1185_v29  ;;  %v3085_v33 = vpop.f32.mrf.mxu2 }
 0x1ae   : > { %v1215_v21 = vadd.f32 %v1214_v46, %v1186_v18  ;;  %v1711_v18 = vmax.f32 %v1703_v6, %v1689_v10  ;;  %v3163_v10 = vunpack.c.l.bf16 %v395_v3 }
 0x1b0   : > { %v1233_v47 = vmax.f32 %v1215_v21, 0.0  ;;  %v1712_v21 = vmax.f32 %v1704_v4, %v1696_v30 }
 0x1b2   : > { %v1241_v25 = vrot.slane %v1233_v47, 7  ;;  %v2387_v39 = vpack.i.bf16 %v1233_v47, %v3083_v19  ;;  %v1265_v49 = vrot.slane %v1233_v47, 1  ;;  %v1718_v37 = vpack.c.bf16 %v1712_v21, %v1711_v18 }
 0x1b3   : > { %v1188_v41 = vpop.f32.mrf.mxu0 }
 0x1b4   : > { %v1189_v28 = vadd.f32 %v3077_v53, %v1188_v41  ;;  %2388 = vrot.lane.b32.xlu2 %v2387_v39, %s2496_s13  ;;  %v3101_v15 = vsel %vm689_vm2, %v1240_v56, %v1241_v25  ;;  %v903_v46 = vpop.f32.mrf.mxu2  ;;  %v1278_v11 = vsel %vm730_vm3, %v1264_v17, %v1265_v49  ;;  %2245 = vmatmul.msk.bf16.gmra.mxu1 %vm549_vm1, %v1718_v37 }
 0x1b5   : > { %v1750_v4 = vpop.f32.mrf.mxu1 }
 0x1b6   : > { %v1218_v60 = vadd.f32 %v1217_v7, %v1189_v28  ;;  %v3123_v7 = vpop.f32.mrf.mxu3 }
 0x1b8   : > { %v3111_v2 = vmax.f32 %v1218_v60, 0.0 }
 0x1ba   : > { %v1242_v8 = vrot.slane %v3111_v2, 7  ;;  %v1266_v40 = vrot.slane %v3111_v2, 1 }
 0x1bb   : > { %v1190_v29 = vpop.f32.mrf.mxu0 }
 0x1bc   : > { %v1191_v47 = vadd.f32 %v3077_v53, %v1190_v29  ;;  %v1277_v39 = vsel %vm730_vm3, %v1265_v49, %v1266_v40  ;;  %v3137_v41 = vsel %vm689_vm2, %v1241_v25, %v1242_v8 }
 0x1bd   : > { %v1281_v28 = vsel %vm2691_vm4, 0.0, %v1277_v39 }
 0x1be   : > { %v1220_v59 = vadd.f32 %v1219_v62, %v1191_v47  ;;  %v2392_v60 = vpack.i.bf16 %v1281_v28, %v1278_v11  ;;  %v3157_v62 = vunpack.c.h.bf16 %v393_v31  ;;  %v1683_v31 = vrot.slane %v3163_v10, 1 }
 0x1c0   : > { %v1235_v63 = vmax.f32 %v1220_v59, 0.0  ;;  %2393 = vrot.lane.b32.xlu0 %v2392_v60, %s3554_s14  ;;  %v1658_v29 = vrot.slane %v3157_v62, 7  ;;  %v1682_v21 = vrot.slane %v3157_v62, 1 }
 0x1c2   : > { %v1243_v25 = vrot.slane %v1235_v63, 7  ;;  %v2397_v26 = vpack.i.bf16 %v1235_v63, %v3111_v2  ;;  %v1657_v2 = vrot.slane %v3103_v57, 7  ;;  %v1267_v39 = vrot.slane %v1235_v63, 1 }
 0x1c3   : > { %v1193_v52 = vpop.f32.mrf.mxu0  ;;  %v1686_v11 = vsel %vm730_vm3, %v1682_v21, %v1683_v31 }
 0x1c4   : > { %v1194_v58 = vadd.f32 %v3077_v53, %v1193_v52  ;;  %2398 = vrot.lane.b32.xlu1 %v2397_v26, %s2496_s13  ;;  %v3152_v49 = vpop.f32.mrf.mxu2  ;;  %v3154_v54 = vpop.f32.mrf.mxu3  ;;  %v3161_v6 = vsel %vm689_vm2, %v1242_v8, %v1243_v25  ;;  %v1664_v18 = vsel %vm689_vm2, %v1656_v61, %v1657_v2  ;;  %v3175_v8 = vld [vmem:[%s3524_s4] ss:$0 sm:$0xff]  ;;  %v1687_v26 = vsel %vm730_vm3, %v1681_v5, %v1682_v21 }
 0x1c5   : > { %v1673_v61 = vsel %vm2923_vm10, %v3103_v57, %v1664_v18  ;;  %v1698_v63 = vsel %vm2814_vm7, %v3157_v62, %v1686_v11  ;;  %v902_v3 = vadd.f32 %v3175_v8, %v3085_v33  ;;  %v904_v5 = vadd.f32 %v3175_v8, %v903_v46  ;;  %v3214_v33 = vld [vmem:[%s3530_s10] ss:$0 sm:$0xff]  ;;  %v1752_v46 = vpop.f32.mrf.mxu1 }
 0x1c6   : > { %v1223_v30 = vadd.f32 %v3072_v9, %v1194_v58  ;;  %v1663_v9 = vsel %vm689_vm2, %v1657_v2, %v1658_v29  ;;  %v1705_v28 = vmax.f32 %v1673_v61, %v3103_v57  ;;  %v1276_v21 = vsel %vm730_vm3, %v1266_v40, %v1267_v39 }
 0x1c7   : > { %v1706_v37 = vmax.f32 %v1663_v9, %v3157_v62  ;;  %v933_v35 = vadd.f32 %v3123_v7, %v904_v5  ;;  %v2297_v5 = vld [vmem:[%s3527_s7 + $0x78] sm:$0xff] }
 0x1c8   : > { %v3177_v47 = vmax.f32 %v1223_v30, 0.0  ;;  %v1713_v58 = vmax.f32 %v1705_v28, %v1687_v26  ;;  %1571 = vmatpush.bf16.msra.mxu2 %v2297_v5  ;;  %v2287_v5 = vld [vmem:[%s3527_s7 + $0x28] sm:$0xff] }
 0x1c9   : > { %v1714_v9 = vmax.f32 %v1706_v37, %v1698_v63  ;;  %v1753_v63 = vadd.f32 %v3214_v33, %v1752_v46 }
 0x1ca   : > { %v1244_v59 = vrot.slane %v3177_v47, 7  ;;  %v1268_v60 = vrot.slane %v3177_v47, 1 }
 0x1cb   : > { %v1195_v52 = vpop.f32.mrf.mxu0  ;;  %v1719_v26 = vpack.c.bf16 %v1714_v9, %v1713_v58 }
 0x1cc   : > { %v1196_v57 = vadd.f32 %v3077_v53, %v1195_v52  ;;  %v908_v2 = vpop.f32.mrf.mxu2  ;;  %v3202_v30 = vpop.f32.mrf.mxu3  ;;  %v1275_v18 = vsel %vm730_vm3, %v1267_v39, %v1268_v60  ;;  %v3218_v11 = vsel %vm689_vm2, %v1243_v25, %v1244_v59  ;;  %v931_v52 = vadd.f32 %v3087_v23, %v902_v3 }
 0x1cd   : > { %v1283_v61 = vsel %vm2755_vm6, 0.0, %v1275_v18  ;;  %2246 = vmatmul.msk.bf16.gmra.mxu1 %vm549_vm1, %v1719_v26  ;;  %v1751_v39 = vadd.f32 %v3214_v33, %v1750_v4  ;;  %v951_v4 = vmax.f32 %v933_v35, 0.0  ;;  %v1659_v35 = vrot.slane %v3163_v10, 7 }
 0x1ce   : > { %v1225_v28 = vadd.f32 %v3080_v12, %v1196_v57  ;;  %v2402_v37 = vpack.i.bf16 %v1283_v61, %v1276_v21  ;;  %v950_v57 = vmax.f32 %v931_v52, 0.0  ;;  %v1771_v61 = vmax.f32 %v1753_v63, 0.0 }
 0x1cf   : > { %v1770_v9 = vmax.f32 %v1751_v39, 0.0  ;;  %v3253_v46 = vpack.c.bf16 %v951_v4, %v951_v4  ;;  %v1684_v39 = vrot.slane %v2945_v36, 1  ;;  %v909_v63 = vadd.f32 %v3175_v8, %v908_v2 }
 0x1d0   : > { %v3222_v40 = vmax.f32 %v1225_v28, 0.0  ;;  %2403 = vrot.lane.b32.xlu2 %v2402_v37, %s3554_s14  ;;  %v3249_v37 = vpack.c.bf16 %v950_v57, %v950_v57  ;;  %v3269_v57 = vpack.c.bf16 %v1771_v61, %v1771_v61  ;;  %v1662_v2 = vsel %vm689_vm2, %v1658_v29, %v1659_v35 }
 0x1d1   : > { %v3255_v52 = vpack.c.bf16 %v1770_v9, %v1770_v9  ;;  %v1675_v62 = vsel %vm2963_vm12, %v3163_v10, %v1662_v2  ;;  %v1685_v29 = vsel %vm730_vm3, %v1683_v31, %v1684_v39  ;;  %v2286_v31 = vld [vmem:[%s3527_s7 + $0x20] sm:$0xff] }
 0x1d2   : > { %v1245_v25 = vrot.slane %v3222_v40, 7  ;;  %v2407_v12 = vpack.i.bf16 %v3222_v40, %v3177_v47  ;;  %v2289_v47 = vld [vmem:[%s3527_s7 + $0x38] sm:$0xff]  ;;  %v1269_v28 = vrot.slane %v3222_v40, 1  ;;  %v2299_v40 = vld [vmem:[%s3527_s7 + $0x88] sm:$0xff]  ;;  %v1707_v1 = vmax.f32 %v1675_v62, %v3163_v10 }
 0x1d3   : > { %v1198_v58 = vpop.f32.mrf.mxu0  ;;  %1542 = vmatpush.bf16.msra.mxu3 %v2289_v47  ;;  %1606 = vmatpush.bf16.msra.mxu0 %v2299_v40 }
 0x1d4   : > { %v1199_v23 = vadd.f32 %v3077_v53, %v1198_v58  ;;  %2408 = vrot.lane.b32.xlu0 %v2407_v12, %s2496_s13  ;;  %v911_v3 = vpop.f32.mrf.mxu2  ;;  %v940_v18 = vpop.f32.mrf.mxu3  ;;  %v3236_v7 = vsel %vm689_vm2, %v1244_v59, %v1245_v25  ;;  %v2288_v59 = vld [vmem:[%s3527_s7 + $0x30] sm:$0xff]  ;;  %v907_v12 = vadd.f32 %v3175_v8, %v3152_v49  ;;  %v1274_v47 = vsel %vm730_vm3, %v1268_v60, %v1269_v28  ;;  %v2295_v49 = vld [vmem:[%s3527_s7 + $0x68] sm:$0xff] }
 0x1d5   : > { %v912_v4 = vadd.f32 %v3175_v8, %v911_v3  ;;  %v1715_v10 = vmax.f32 %v1707_v1, %v1685_v29 }
 0x1d6   : > { %v1228_v21 = vadd.f32 %v3091_v27, %v1199_v23  ;;  %v2296_v27 = vld [vmem:[%s3527_s7 + $0x70] sm:$0xff]  ;;  %v936_v2 = vadd.f32 %v3154_v54, %v907_v12  ;;  %v2285_v54 = vld [vmem:[%s3527_s7 + $0x18] sm:$0xff] }
 0x1d7   : > { %1543 = vmatpush.bf16.msra.mxu3 %v2288_v59  ;;  %1572 = vmatpush.bf16.msra.mxu2 %v2296_v27  ;;  %v1661_v59 = vsel %vm689_vm2, %v1659_v35, %v1660_v48 }
 0x1d8   : > { %v3251_v26 = vmax.f32 %v1228_v21, 0.0  ;;  %v1708_v32 = vmax.f32 %v1661_v59, %v2945_v36 }
 0x1da   : > { %v1270_v58 = vrot.slane %v3251_v26, 1  ;;  %v1246_v23 = vrot.slane %v3251_v26, 7 }
 0x1db   : > { %v1200_v9 = vpop.f32.mrf.mxu0  ;;  %1544 = vmatpush.bf16.msra.mxu3 %v2287_v5  ;;  %1573 = vmatpush.bf16.msra.mxu2 %v2295_v49  ;;  %v1815_v5 = vunpack.c.l.b16 %v3253_v46  ;;  %v938_v49 = vadd.f32 %v3202_v30, %v909_v63 }
 0x1dc   : > { %v1201_v3 = vadd.f32 %v3077_v53, %v1200_v9  ;;  %v913_v21 = vpop.f32.mrf.mxu2  ;;  %v942_v61 = vpop.f32.mrf.mxu3  ;;  %v1273_v60 = vsel %vm730_vm3, %v1269_v28, %v1270_v58  ;;  %v1692_v28 = vsel %vm730_vm3, %v1684_v39, %v1677_v20  ;;  %v3317_v20 = vsel %vm689_vm2, %v1245_v25, %v1246_v23 }
 0x1dd   : > { %v914_v27 = vadd.f32 %v3175_v8, %v913_v21  ;;  %v1285_v53 = vsel %vm2814_vm7, 0.0, %v1273_v60  ;;  %v1700_v35 = vsel %vm2842_vm8, %v2945_v36, %v1692_v28  ;;  %v941_v39 = vadd.f32 %v940_v18, %v912_v4 }
 0x1de   : > { %v1230_v48 = vadd.f32 %v3139_v45, %v1201_v3  ;;  %v2412_v40 = vpack.i.bf16 %v1285_v53, %v1274_v47  ;;  %v1814_v45 = vunpack.c.l.b16 %v3249_v37  ;;  %v1716_v3 = vmax.f32 %v1708_v32, %v1700_v35  ;;  %v2283_v35 = vld [vmem:[%s3527_s7 + $0x8] sm:$0xff] }
 0x1df   : > { %v943_v9 = vadd.f32 %v942_v61, %v914_v27  ;;  %v1862_v37 = vunpack.c.l.b16 %v3255_v52  ;;  %v1863_v4 = vunpack.c.l.b16 %v3269_v57  ;;  %1545 = vmatpush.bf16.msra.mxu3 %v2286_v31  ;;  %v954_v30 = vmax.f32 %v941_v39, 0.0 }
 0x1e0   : > { %v3320_v47 = vmax.f32 %v1230_v48, 0.0  ;;  %2413 = vrot.lane.b32.xlu1 %v2412_v40, %s3554_s14  ;;  %v1720_v46 = vpack.c.bf16 %v1716_v3, %v1715_v10  ;;  %v1822_v59 = vpack.c.b16 %v1815_v5, %v1814_v45  ;;  %v953_v62 = vmax.f32 %v938_v49, 0.0 }
 0x1e1   : > { %v955_v21 = vmax.f32 %v943_v9, 0.0  ;;  %v962_v29 = vpack.c.bf16 %v954_v30, %v954_v30 }
 0x1e2   : > { %v1247_v36 = vrot.slane %v3320_v47, 7  ;;  %v1271_v25 = vrot.slane %v3320_v47, 1  ;;  %v2417_v18 = vpack.i.bf16 %v3320_v47, %v3251_v26  ;;  %2247 = vmatmul.msk.bf16.gmra.mxu1 %vm549_vm1, %v1720_v46  ;;  %v961_v48 = vpack.c.bf16 %v953_v62, %v953_v62 }
 0x1e3   : > { %v963_v27 = vpack.c.bf16 %v955_v21, %v955_v21  ;;  %1546 = vmatpush.bf16.msra.mxu3 %v2285_v54  ;;  %v1818_v1 = vunpack.c.l.b16 %v962_v29 }
 0x1e4   : > { %2418 = vrot.lane.b32.xlu2 %v2417_v18, %s2496_s13  ;;  %v916_v12 = vpop.f32.mrf.mxu2  ;;  %v945_v63 = vpop.f32.mrf.mxu3  ;;  %v1272_v61 = vsel %vm730_vm3, %v1270_v58, %v1271_v25  ;;  %v1279_v26 = vsel %vm730_vm3, %v1271_v25, %v1264_v17  ;;  %v3346_v52 = vsel %vm689_vm2, %v1246_v23, %v1247_v36  ;;  %v952_v58 = vmax.f32 %v936_v2, 0.0  ;;  %v2284_v17 = vld [vmem:[%s3527_s7 + $0x10] sm:$0xff]  ;;  %v2282_v25 = vld [vmem:[%s3527_s7] sm:$0xff] }
 0x1e5   : > { %v917_v57 = vadd.f32 %v3175_v8, %v916_v12  ;;  %v1287_v60 = vsel %vm2842_vm8, 0.0, %v1279_v26  ;;  %v1870_v23 = vpack.c.b16 %v1863_v4, %v1862_v37  ;;  %v1819_v40 = vunpack.c.l.b16 %v963_v27  ;;  %v2294_v18 = vld [vmem:[%s3527_s7 + $0x60] sm:$0xff]  ;;  %v2292_v12 = vld [vmem:[%s3527_s7 + $0x50] sm:$0xff] }
 0x1e6   : > { %v2422_v53 = vpack.i.bf16 %v1287_v60, %v1272_v61  ;;  %v960_v28 = vpack.c.bf16 %v952_v58, %v952_v58  ;;  %v1817_v10 = vunpack.c.l.b16 %v961_v48  ;;  %1574 = vmatpush.bf16.msra.mxu2 %v2294_v18  ;;  %v2298_v4 = vld [vmem:[%s3527_s7 + $0x80] sm:$0xff]  ;;  %v1255_v61 = vsel %vm689_vm2, %v1247_v36, %v1240_v56 }
 0x1e7   : > { %v946_v13 = vadd.f32 %v945_v63, %v917_v57  ;;  %1547 = vmatpush.bf16.msra.mxu3 %v2284_v17  ;;  %v1824_v5 = vpack.c.b16 %v1819_v40, %v1818_v1  ;;  %1607 = vmatpush.bf16.msra.mxu0 %v2298_v4  ;;  %v2291_v63 = vld [vmem:[%s3527_s7 + $0x48] sm:$0xff]  ;;  %v2290_v26 = vld [vmem:[%s3527_s7 + $0x40] sm:$0xff]  ;;  %v1256_v58 = vsel %vm2886_vm9, 0.0, %v1255_v61 }
 0x1e8   : > { %2423 = vrot.lane.b32.xlu0 %v2422_v53, %s3554_s14  ;;  %1826 = vrot.lane.b32.xlu1 %v1822_v59, %s3554_s14  ;;  %v1816_v39 = vunpack.c.l.b16 %v960_v28 }
 0x1e9   : > { %v956_v32 = vmax.f32 %v946_v13, 0.0 }
 0x1ea   : > { %v1823_v21 = vpack.c.b16 %v1817_v10, %v1816_v39  ;;  %v1262_v10 = vsel %vm2963_vm12, 0.0, %v3317_v20 }
 0x1eb   : > { %1548 = vmatpush.bf16.msra.mxu3 %v2283_v35  ;;  %v964_v49 = vpack.c.bf16 %v956_v32, %v956_v32 }
 0x1ec   : > { %v918_v9 = vpop.f32.mrf.mxu2  ;;  %1874 = vrot.lane.b32.xlu2 %v1870_v23, %s2496_s13  ;;  %v947_v31 = vpop.f32.mrf.mxu3 }
 0x1ed   : > { %v919_v45 = vadd.f32 %v3175_v8, %v918_v9  ;;  %v2293_v8 = vld [vmem:[%s3527_s7 + $0x58] sm:$0xff]  ;;  %v1820_v54 = vunpack.c.l.b16 %v964_v49 }
 0x1ee   : > { %1575 = vmatpush.bf16.msra.mxu2 %v2293_v8 }
 0x1ef   : > { %v948_v2 = vadd.f32 %v947_v31, %v919_v45  ;;  %1549 = vmatpush.bf16.msra.mxu3 %v2282_v25 }
 0x1f0   : > { %1830 = vrot.lane.b32.xlu0 %v1824_v5, %s3554_s14 }
 0x1f1   : > { %v957_v3 = vmax.f32 %v948_v2, 0.0 }
 0x1f2   : > { %1576 = vmatpush.bf16.msra.mxu2 %v2292_v12 }
 0x1f3   : > { %v965_v37 = vpack.c.bf16 %v957_v3, %v957_v3 }
 0x1f4   : > { %1828 = vrot.lane.b32.xlu2 %v1823_v21, %s3554_s14 }
 0x1f5   : > { %v1821_v46 = vunpack.c.l.b16 %v965_v37 }
 0x1f6   : > { %1577 = vmatpush.bf16.msra.mxu2 %v2291_v63 }
 0x1f7   : > { %v1825_v30 = vpack.c.b16 %v1821_v46, %v1820_v54 }
 0x1f9   : > { %1832 = vrot.lane.b32.xlu1 %v1825_v30, %s3554_s14  ;;  %s2445_s14 = sshra.s32 %s1971_s24, 4  ;;  %s2446_s14 = int_to_ptr.hbm [resolvable:$true] %s2445_s14 }
 0x1fa   : > { %1578 = vmatpush.bf16.msra.mxu2 %v2290_v26  ;;  %s2447_s25 = scalar_lea.hbm %s2446_s14, 64  ;;  %p2452_p0 = scmp.lt.s32.totalorder %s2446_s14, %s3531_s11 }
 0x1fb   : > { %p2448_p11 = scmp.ne.s32.totalorder %s2446_s14, %s2447_s25  ;;  %p2453_p1 = scmp.lt.s32.totalorder %s2451_s12, %s2447_s25 }
 0x1fd   : > { %p2449_p12 = pnand %p2448_p11, %p2597_p5  ;;  %p2454_p2 = por %p2453_p1, %p2452_p0 }
 0x1ff   : > { %p2450_p13 = pneg %p2449_p12 }
 0x201   : > { %p2455_p3 = pnand %p2454_p2, %p2450_p13 }
 0x20e   : > { %v2389_v57 = vpop.permute.xlu2 %2388 }
 0x20f   : > { %v2391_v60 = vunpack.i.h.bf16 %v2389_v57  ;;  %v2390_v59 = vunpack.i.l.bf16 %v2389_v57 }
 0x211   : > { %v1354_v19 = vsel %vm1352_vm13, %v3101_v15, %v2391_v60  ;;  %v1353_v47 = vsel %vm1352_vm13, %v1256_v58, %v2390_v59  ;;  %v1258_v15 = vsel %vm2952_vm11, 0.0, %v3137_v41 }
 0x212   : > { %v1369_v62 = vpack.c.bf16 %v1354_v19, %v1353_v47 }
 0x214   : > { %1550 = vmatmul.bf16.vlgmr.msra.gmra.mxu3 %v1369_v62 }
 0x22a   : > { %v2404_v29 = vpop.permute.xlu2 %2403 }
 0x22b   : > { %v2406_v39 = vunpack.i.h.bf16 %v2404_v29  ;;  %v2405_v55 = vunpack.i.l.bf16 %v2404_v29 }
 0x22d   : > { %v1374_v21 = vpack.c.bf16 %v2406_v39, %v2405_v55 }
 0x231   : > { %v1755_v1 = vpop.f32.mrf.mxu1 }
 0x232   : > { %v2394_v22 = vpop.permute.xlu0 %2393  ;;  %v1756_v9 = vadd.f32 %v3214_v33, %v1755_v1 }
 0x233   : > { %v2396_v56 = vunpack.i.h.bf16 %v2394_v22  ;;  %v2395_v36 = vunpack.i.l.bf16 %v2394_v22 }
 0x234   : > { %v1772_v41 = vmax.f32 %v1756_v9, 0.0 }
 0x235   : > { %v1361_v27 = vsel %vm763_vm5, %v2390_v59, %v2395_v36  ;;  %v1362_v53 = vsel %vm763_vm5, %v2391_v60, %v2396_v56  ;;  %v1371_v17 = vpack.c.bf16 %v2396_v56, %v2395_v36 }
 0x236   : > { %v1370_v23 = vpack.c.bf16 %v1362_v53, %v1361_v27  ;;  %v2399_v50 = vpop.permute.xlu1 %2398  ;;  %v1780_v18 = vpack.c.bf16 %v1772_v41, %v1772_v41 }
 0x237   : > { %v2401_v13 = vunpack.i.h.bf16 %v2399_v50  ;;  %v2400_v28 = vunpack.i.l.bf16 %v2399_v50  ;;  %2240 = vmatmul.msk.bf16.vlgmr.msra.gmra.mxu0 %vm1529_vm14, %v1371_v17 }
 0x238   : > { %1579 = vmatmul.bf16.vlgmr.msra.gmra.mxu2 %v1370_v23  ;;  %v1864_v12 = vunpack.c.l.b16 %v1780_v18 }
 0x239   : > { %v1355_v48 = vsel %vm1352_vm13, %v1258_v15, %v2400_v28  ;;  %v1356_v40 = vsel %vm1352_vm13, %v3161_v6, %v2401_v13  ;;  %v1363_v49 = vsel %vm763_vm5, %v2400_v28, %v2405_v55  ;;  %v1364_v3 = vsel %vm763_vm5, %v2401_v13, %v2406_v39  ;;  %v1757_v25 = vpop.f32.mrf.mxu1 }
 0x23a   : > { %v1372_v35 = vpack.c.bf16 %v1356_v40, %v1355_v48  ;;  %v1758_v37 = vadd.f32 %v3214_v33, %v1757_v25  ;;  %v1373_v0 = vpack.c.bf16 %v1364_v3, %v1363_v49  ;;  %v3439_v25 = vld [vmem:[%s3528_s8] ss:$0 sm:$0xff] }
 0x23c   : > { %1555 = vmatmul.bf16.gmra.mxu3 %v1372_v35  ;;  %v1773_v54 = vmax.f32 %v1758_v37, 0.0 }
 0x23e   : > { %v2419_v31 = vpop.permute.xlu2 %2418  ;;  %v1781_v63 = vpack.c.bf16 %v1773_v54, %v1773_v54 }
 0x23f   : > { %v2421_v32 = vunpack.i.h.bf16 %v2419_v31  ;;  %v2420_v45 = vunpack.i.l.bf16 %v2419_v31 }
 0x240   : > { %v1865_v26 = vunpack.c.l.b16 %v1781_v63 }
 0x241   : > { %v1359_v5 = vsel %vm1352_vm13, %v1262_v10, %v2420_v45  ;;  %v1360_v6 = vsel %vm1352_vm13, %v3346_v52, %v2421_v32  ;;  %v1260_v52 = vsel %vm2923_vm10, 0.0, %v3218_v11 }
 0x242   : > { %v1378_v2 = vpack.c.bf16 %v1360_v6, %v1359_v5  ;;  %v1871_v60 = vpack.c.b16 %v1865_v26, %v1864_v12 }
 0x244   : > { %1876 = vrot.lane.b32.xlu0 %v1871_v60, %s2496_s13 }
 0x246   : > { %v2409_v8 = vpop.permute.xlu0 %2408 }
 0x247   : > { %v2411_v20 = vunpack.i.h.bf16 %v2409_v8  ;;  %v2410_v4 = vunpack.i.l.bf16 %v2409_v8  ;;  %2241 = vmatmul.msk.bf16.gmra.mxu0 %vm1529_vm14, %v1374_v21 }
 0x248   : > { %1584 = vmatmul.bf16.gmra.mxu2 %v1373_v0 }
 0x249   : > { %v1357_v46 = vsel %vm1352_vm13, %v1260_v52, %v2410_v4  ;;  %v1358_v30 = vsel %vm1352_vm13, %v3236_v7, %v2411_v20  ;;  %v641_v52 = vpack.c.bf16 %v2734_v16, %v2734_v16 }
 0x24a   : > { %v1375_v61 = vpack.c.bf16 %v1358_v30, %v1357_v46  ;;  %v1760_v57 = vpop.f32.mrf.mxu1  ;;  %v642_v46 = vpack.c.bf16 %v2676_v44, %v2676_v44 }
 0x24b   : > { %v1761_v59 = vadd.f32 %v3214_v33, %v1760_v57  ;;  %v1794_v57 = vunpack.c.l.b16 %v641_v52 }
 0x24c   : > { %1560 = vmatmul.bf16.gmra.mxu3 %v1375_v61  ;;  %v1795_v60 = vunpack.c.l.b16 %v642_v46 }
 0x24d   : > { %v1774_v19 = vmax.f32 %v1761_v59, 0.0 }
 0x24e   : > { %v1802_v16 = vpack.c.b16 %v1795_v60, %v1794_v57 }
 0x24f   : > { %v1782_v36 = vpack.c.bf16 %v1774_v19, %v1774_v19 }
 0x251   : > { %v1866_v17 = vunpack.c.l.b16 %v1782_v36 }
 0x252   : > { %v2414_v58 = vpop.permute.xlu1 %2413  ;;  %v1762_v22 = vpop.f32.mrf.mxu1 }
 0x253   : > { %v2416_v38 = vunpack.i.h.bf16 %v2414_v58  ;;  %v2415_v11 = vunpack.i.l.bf16 %v2414_v58  ;;  %v1763_v27 = vadd.f32 %v3214_v33, %v1762_v22 }
 0x255   : > { %v1377_v47 = vpack.c.bf16 %v2416_v38, %v2415_v11  ;;  %v1365_v62 = vsel %vm763_vm5, %v2410_v4, %v2415_v11  ;;  %v1366_v7 = vsel %vm763_vm5, %v2411_v20, %v2416_v38  ;;  %v1775_v53 = vmax.f32 %v1763_v27, 0.0  ;;  %v1875_v27 = vpop.permute.xlu2 %1874 }
 0x256   : > { %v1376_v56 = vpack.c.bf16 %v1366_v7, %v1365_v62 }
 0x257   : > { %2242 = vmatmul.msk.bf16.gmra.mxu0 %vm1529_vm14, %v1377_v47  ;;  %v1783_v29 = vpack.c.bf16 %v1775_v53, %v1775_v53 }
 0x258   : > { %1589 = vmatmul.bf16.gmra.mxu2 %v1376_v56 }
 0x259   : > { %v1867_v50 = vunpack.c.l.b16 %v1783_v29 }
 0x25a   : > { %v2424_v23 = vpop.permute.xlu0 %2423  ;;  %v1827_v11 = vpop.permute.xlu1 %1826 }
 0x25b   : > { %v1872_v13 = vpack.c.b16 %v1867_v50, %v1866_v17  ;;  %v2426_v28 = vunpack.i.h.bf16 %v2424_v23  ;;  %v2425_v15 = vunpack.i.l.bf16 %v2424_v23  ;;  %v1884_v56 = vsel %vm763_vm5, %v1802_v16, %v1827_v11 }
 0x25c   : > { %1565 = vmatmul.bf16.gmra.mxu3 %v1378_v2  ;;  %v1914_v29 = vunpack.c.l.b16 %v1884_v56  ;;  %v1916_v23 = vunpack.c.h.b16 %v1884_v56 }
 0x25d   : > { %1878 = vrot.lane.b32.xlu1 %v1872_v13, %s2496_s13  ;;  %v1367_v40 = vsel %vm763_vm5, %v2420_v45, %v2425_v15  ;;  %v1368_v35 = vsel %vm763_vm5, %v2421_v32, %v2426_v28  ;;  %v1380_v1 = vpack.c.bf16 %v2426_v28, %v2425_v15 }
 0x25e   : > { %v1379_v9 = vpack.c.bf16 %v1368_v35, %v1367_v40 }
 0x25f   : > { %v1765_v48 = vpop.f32.mrf.mxu1 }
 0x260   : > { %v1766_v31 = vadd.f32 %v3214_v33, %v1765_v48 }
 0x262   : > { %v1776_v55 = vmax.f32 %v1766_v31, 0.0 }
 0x264   : > { %v1784_v5 = vpack.c.bf16 %v1776_v55, %v1776_v55 }
 0x266   : > { %v1868_v2 = vunpack.c.l.b16 %v1784_v5 }
 0x267   : > { %2243 = vmatmul.msk.bf16.gmra.mxu0 %vm1529_vm14, %v1380_v1  ;;  %v1767_v39 = vpop.f32.mrf.mxu1  ;;  %v643_v1 = vpack.c.bf16 %v2685_v51, %v2685_v51 }
 0x268   : > { %1594 = vmatmul.bf16.gmra.mxu2 %v1379_v9  ;;  %v1768_v10 = vadd.f32 %v3214_v33, %v1767_v39  ;;  %v644_v9 = vpack.c.bf16 %v2732_v24, %v2732_v24 }
 0x269   : > { %v1796_v5 = vunpack.c.l.b16 %v643_v1 }
 0x26a   : > { %v1777_v41 = vmax.f32 %v1768_v10, 0.0  ;;  %v1831_v10 = vpop.permute.xlu0 %1830 }
 0x26b   : > { %v1833_v11 = vpop.permute.xlu1 %1832 }
 0x26c   : > { %v1785_v6 = vpack.c.bf16 %v1777_v41, %v1777_v41 }
 0x26e   : > { %v1869_v49 = vunpack.c.l.b16 %v1785_v6  ;;  %v1797_v6 = vunpack.c.l.b16 %v644_v9 }
 0x270   : > { %v1873_v3 = vpack.c.b16 %v1869_v49, %v1868_v2 }
 0x272   : > { %1880 = vrot.lane.b32.xlu2 %v1873_v3, %s2496_s13  ;;  %s378_s13 = sand.u32 1, %s2485_s18   ;;  %v1829_v3 = vpop.permute.xlu2 %1828 }
 0x273   : > { %s2037_s0 = sshll.u32 %s378_s13, 6  ;;  %s1955_s21 = scalar_lea.sflag [#allocation3], %s378_s13 }
 0x274   : > { %s3458_s29 = scalar_lea.vmem [#allocation2], %s2037_s0 }
 0x275   : > { %s1968_s22 = sshll.u32 %s3458_s29, 4  ;;  %s1969_s22 = int_to_ptr.vmem [resolvable:$true] %s1968_s22 }
 0x297   : > { %v1551_v32 = vpop.f32.mrf.mxu3 }
 0x298   : > { %v1552_v18 = vadd.f32 %v3439_v25, %v1551_v32 }
 0x29f   : > { %v1553_v21 = vpop.f32.mrf.mxu3 }
 0x2a0   : > { %v1554_v4 = vadd.f32 %v3439_v25, %v1553_v21  ;;  %v1803_v21 = vpack.c.b16 %v1797_v6, %v1796_v5  ;;  %v648_v5 = vpack.c.bf16 %v2753_v34, %v2753_v34 }
 0x2b4   : > { %v1609_v45 = vpop.f32.mrf.mxu0 }
 0x2bb   : > { %v1580_v33 = vpop.f32.mrf.mxu2 }
 0x2bc   : > { %v1581_v37 = vadd.f32 %v1580_v33, %v1552_v18  ;;  %v1611_v8 = vpop.f32.mrf.mxu0 }
 0x2be   : > { %v1610_v20 = vadd.f32 %v1609_v45, %v1581_v37 }
 0x2bf   : > { %v1556_v0 = vpop.f32.mrf.mxu3 }
 0x2c0   : > { %v1629_v30 = vmax.f32 %v1610_v20, 0.0  ;;  %v1557_v19 = vadd.f32 %v3439_v25, %v1556_v0  ;;  %v1887_v0 = vsel %vm763_vm5, %v1803_v21, %v1829_v3 }
 0x2c1   : > { %v1918_v52 = vunpack.c.l.b16 %v1887_v0  ;;  %v1920_v46 = vunpack.c.h.b16 %v1887_v0 }
 0x2c2   : > { %v1637_v59 = vpack.c.bf16 %v1629_v30, %v1629_v30 }
 0x2c3   : > { %v1582_v54 = vpop.f32.mrf.mxu2 }
 0x2c4   : > { %v1583_v12 = vadd.f32 %v1582_v54, %v1554_v4  ;;  %v1614_v63 = vpop.f32.mrf.mxu0  ;;  %v1842_v62 = vunpack.c.l.b16 %v1637_v59  ;;  %v645_v59 = vpack.c.bf16 %v2727_v14, %v2727_v14 }
 0x2c6   : > { %v1612_v61 = vadd.f32 %v1611_v8, %v1583_v12  ;;  %v1877_v8 = vpop.permute.xlu0 %1876 }
 0x2c7   : > { %v1558_v26 = vpop.f32.mrf.mxu3 }
 0x2c8   : > { %v1630_v58 = vmax.f32 %v1612_v61, 0.0  ;;  %v1559_v15 = vadd.f32 %v3439_v25, %v1558_v26 }
 0x2ca   : > { %v1638_v38 = vpack.c.bf16 %v1630_v58, %v1630_v58  ;;  %v646_v58 = vpack.c.bf16 %v2768_v42, %v2768_v42 }
 0x2cb   : > { %v1585_v47 = vpop.f32.mrf.mxu2 }
 0x2cc   : > { %v1843_v44 = vunpack.c.l.b16 %v1638_v38  ;;  %v1586_v7 = vadd.f32 %v1585_v47, %v1557_v19  ;;  %v1616_v22 = vpop.f32.mrf.mxu0 }
 0x2ce   : > { %v1850_v36 = vpack.c.b16 %v1843_v44, %v1842_v62  ;;  %v1615_v17 = vadd.f32 %v1614_v63, %v1586_v7  ;;  %v1798_v62 = vunpack.c.l.b16 %v645_v59  ;;  %v1799_v44 = vunpack.c.l.b16 %v646_v58 }
 0x2cf   : > { %v1561_v28 = vpop.f32.mrf.mxu3 }
 0x2d0   : > { %v1896_v53 = vsel %vm1352_vm13, %v1850_v36, %v1875_v27  ;;  %v1631_v31 = vmax.f32 %v1615_v17, 0.0  ;;  %v1562_v51 = vadd.f32 %v3439_v25, %v1561_v28  ;;  %v1804_v14 = vpack.c.b16 %v1799_v44, %v1798_v62 }
 0x2d1   : > { %v1915_v50 = vunpack.c.l.b16 %v1896_v53  ;;  %v1917_v13 = vunpack.c.h.b16 %v1896_v53 }
 0x2d2   : > { %v1639_v2 = vpack.c.bf16 %v1631_v31, %v1631_v31 }
 0x2d3   : > { %v1930_v48 = vpack.c.b16 %v1915_v50, %v1914_v29  ;;  %v1931_v40 = vpack.c.b16 %v1917_v13, %v1916_v23  ;;  %v1587_v35 = vpop.f32.mrf.mxu2  ;;  %v1879_v23 = vpop.permute.xlu1 %1878  ;;  %v1890_v50 = vsel %vm763_vm5, %v1804_v14, %v1831_v10  ;;  %v647_v10 = vpack.c.bf16 %v2770_v43, %v2770_v43 }
 0x2d4   : > { %v1588_v39 = vadd.f32 %v1587_v35, %v1559_v15  ;;  %v1619_v41 = vpop.f32.mrf.mxu0  ;;  %v1844_v18 = vunpack.c.l.b16 %v1639_v2  ;;  %v1924_v35 = vunpack.c.h.b16 %v1890_v50 }
 0x2d5   : > { %1946 = vst [vmem:[%s3458_s29] sm:$0xff] %v1930_v48 }
 0x2d6   : > { %1947 = vst [vmem:[%s3458_s29 + $0x8] sm:$0xff] %v1931_v40  ;;  %v1617_v55 = vadd.f32 %v1616_v22, %v1588_v39  ;;  %v1922_v40 = vunpack.c.l.b16 %v1890_v50 }
 0x2d7   : > { %v1563_v24 = vpop.f32.mrf.mxu3 }
 0x2d8   : > { %v1632_v49 = vmax.f32 %v1617_v55, 0.0  ;;  %v1564_v61 = vadd.f32 %v3439_v25, %v1563_v24 }
 0x2da   : > { %v1640_v32 = vpack.c.bf16 %v1632_v49, %v1632_v49 }
 0x2db   : > { %v1590_v45 = vpop.f32.mrf.mxu2 }
 0x2dc   : > { %v1845_v33 = vunpack.c.l.b16 %v1640_v32  ;;  %v1591_v37 = vadd.f32 %v1590_v45, %v1562_v51  ;;  %v1621_v30 = vpop.f32.mrf.mxu0  ;;  %v1800_v51 = vunpack.c.l.b16 %v647_v10  ;;  %v1801_v32 = vunpack.c.l.b16 %v648_v5 }
 0x2de   : > { %v1851_v20 = vpack.c.b16 %v1845_v33, %v1844_v18  ;;  %v1620_v4 = vadd.f32 %v1619_v41, %v1591_v37  ;;  %v1805_v21 = vpack.c.b16 %v1801_v32, %v1800_v51  ;;  %v1881_v37 = vpop.permute.xlu2 %1880 }
 0x2df   : > { %v1566_v47 = vpop.f32.mrf.mxu3 }
 0x2e0   : > { %v1899_v54 = vsel %vm1352_vm13, %v1851_v20, %v1877_v8  ;;  %v1633_v19 = vmax.f32 %v1620_v4, 0.0  ;;  %v1567_v56 = vadd.f32 %v3439_v25, %v1566_v47  ;;  %v1893_v34 = vsel %vm763_vm5, %v1805_v21, %v1833_v11 }
 0x2e1   : > { %v1919_v12 = vunpack.c.l.b16 %v1899_v54  ;;  %v1921_v63 = vunpack.c.h.b16 %v1899_v54  ;;  %v1926_v0 = vunpack.c.l.b16 %v1893_v34  ;;  %v1928_v20 = vunpack.c.h.b16 %v1893_v34 }
 0x2e2   : > { %v1641_v7 = vpack.c.bf16 %v1633_v19, %v1633_v19 }
 0x2e3   : > { %v1932_v26 = vpack.c.b16 %v1919_v12, %v1918_v52  ;;  %v1933_v57 = vpack.c.b16 %v1921_v63, %v1920_v46  ;;  %v1592_v60 = vpop.f32.mrf.mxu2 }
 0x2e4   : > { %v1593_v38 = vadd.f32 %v1592_v60, %v1564_v61  ;;  %v1624_v27 = vpop.f32.mrf.mxu0  ;;  %v1846_v17 = vunpack.c.l.b16 %v1641_v7 }
 0x2e5   : > { %1948 = vst [vmem:[%s3458_s29 + $0x10] sm:$0xff] %v1932_v26 }
 0x2e6   : > { %1949 = vst [vmem:[%s3458_s29 + $0x18] sm:$0xff] %v1933_v57  ;;  %v1622_v16 = vadd.f32 %v1621_v30, %v1593_v38 }
 0x2e7   : > { %v1568_v28 = vpop.f32.mrf.mxu3 }
 0x2e8   : > { %v1634_v22 = vmax.f32 %v1622_v16, 0.0  ;;  %v1569_v31 = vadd.f32 %v3439_v25, %v1568_v28 }
 0x2ea   : > { %v1642_v36 = vpack.c.bf16 %v1634_v22, %v1634_v22 }
 0x2eb   : > { %v1595_v53 = vpop.f32.mrf.mxu2 }
 0x2ec   : > { %v1847_v29 = vunpack.c.l.b16 %v1642_v36  ;;  %v1596_v42 = vadd.f32 %v1595_v53, %v1567_v56  ;;  %v1626_v49 = vpop.f32.mrf.mxu0 }
 0x2ee   : > { %v1852_v13 = vpack.c.b16 %v1847_v29, %v1846_v17  ;;  %v1625_v15 = vadd.f32 %v1624_v27, %v1596_v42 }
 0x2f0   : > { %v1902_v48 = vsel %vm1352_vm13, %v1852_v13, %v1879_v23  ;;  %v1635_v6 = vmax.f32 %v1625_v15, 0.0 }
 0x2f1   : > { %v1923_v1 = vunpack.c.l.b16 %v1902_v48  ;;  %v1925_v9 = vunpack.c.h.b16 %v1902_v48 }
 0x2f2   : > { %v1643_v25 = vpack.c.bf16 %v1635_v6, %v1635_v6 }
 0x2f3   : > { %v1934_v39 = vpack.c.b16 %v1923_v1, %v1922_v40  ;;  %v1935_v55 = vpack.c.b16 %v1925_v9, %v1924_v35  ;;  %v1597_v41 = vpop.f32.mrf.mxu2 }
 0x2f4   : > { %v1598_v2 = vadd.f32 %v1597_v41, %v1569_v31  ;;  %v1848_v18 = vunpack.c.l.b16 %v1643_v25 }
 0x2f5   : > { %1950 = vst [vmem:[%s3458_s29 + $0x20] sm:$0xff] %v1934_v39 }
 0x2f6   : > { %1951 = vst [vmem:[%s3458_s29 + $0x28] sm:$0xff] %v1935_v55  ;;  %v1627_v3 = vadd.f32 %v1626_v49, %v1598_v2 }
 0x2f8   : > { %v1636_v24 = vmax.f32 %v1627_v3, 0.0 }
 0x2fa   : > { %v1644_v45 = vpack.c.bf16 %v1636_v24, %v1636_v24 }
 0x2fc   : > { %v1849_v33 = vunpack.c.l.b16 %v1644_v45 }
 0x2fe   : > { %v1853_v43 = vpack.c.b16 %v1849_v33, %v1848_v18 }
 0x300   : > { %v1905_v8 = vsel %vm1352_vm13, %v1853_v43, %v1881_v37 }
 0x301   : > { %v1927_v4 = vunpack.c.l.b16 %v1905_v8  ;;  %v1929_v54 = vunpack.c.h.b16 %v1905_v8 }
 0x303   : > { %v1936_v52 = vpack.c.b16 %v1927_v4, %v1926_v0  ;;  %v1937_v46 = vpack.c.b16 %v1929_v54, %v1928_v20 }
 0x305   : > { %1952 = vst [vmem:[%s3458_s29 + $0x30] sm:$0xff] %v1936_v52 }
 0x306   : > { %1953 = vst [vmem:[%s3458_s29 + $0x38] sm:$0xff] %v1937_v46 }
 0x307   : > { %2458 = shalt.err (!%p2455_p3)
}
 0x308   : > { %s2497_s13 = smov 128   ;;  %s2498_s29 = smov 8  }
 0x309   : > { %2304 = dma.vmem_to_hbm [thread:$0]  (%p2597_p5), %s1969_s22, 1024, %s1971_s24, %s1955_s21, %s2497_s13, %s2497_s13, %s2498_s29  }
 0x30a PF: > { %p2310_p4 = scmp.ge.s32.totalorder %s2493_s20, 2  ;;  %s1985_s0 = sand.u32 1, %s2481_s17  }
 0x30b   : > { %s1986_s30 = scalar_lea.sflag [#allocation3], %s1985_s0 }
 0x30c   : > { %p2307_p7 = pnand %p2310_p4, %p2601_p6 }
 0x30e   : > { %p2308_p8 = pneg %p2307_p7 }
 0x310   : > { %2476 = dma.done.wait (%p2308_p8), %s1986_s30, 1024  }
 0x311   : > { %2478 = vsyncadd (%p2308_p8), %s1986_s30, 4294966272  ;;  %p21_p9 = scmp.ge.s32.totalorder %s2584_s23, 10   ;;  %s3555_s17 = smov %s2485_s18 }
 0x312   : > { %s3556_s18 = smov %s2489_s19  ;;  %s3557_s19 = smov %s2595_s26 }
 0x313   : > { %s3558_s20 = smov %s2584_s23  ;;  %23 = sbr.rel (!%p21_p9) target bundleno = 5 (0x5), region = 99 }
 0x318   :  { %1992 = vsyncpa [#allocation3], 1 }
 0x319   :  { %1994 = vsyncpa [#allocation3 + $0x1], 1 }

</bundles_post_ra>
